<compile_context>
chip_gen: v7x
topology: tpu7x:2x2x1
jax: 0.10.0
libtpu: 0.0.40
codegen_flags: <defaults>
</compile_context>

<pallas_src>
import functools

import jax
import jax.numpy as jnp
from jax.experimental import pallas as pl
from jax.experimental.pallas import tpu as pltpu


# ---------------------------------------------------------------------------
# Tiling helpers
# ---------------------------------------------------------------------------

def _round_up(x, m):
    return ((x + m - 1) // m) * m


def _sublane_multiple(dtype):
    it = jnp.dtype(dtype).itemsize
    return 8 * max(1, 4 // it)          # 8 (f32), 16 (bf16), 32 (int8/fp8)


def _padded_tile_bytes(rows, cols, dtype):
    it = jnp.dtype(dtype).itemsize
    return (_round_up(max(rows, 1), _sublane_multiple(dtype))
            * _round_up(max(cols, 1), 128) * it)


def _tpu_generation():
    """Returns (vmem_limit_bytes, tile_budget_bytes, tensorcores_per_chip)."""
    try:
        kind = jax.devices()[0].device_kind.lower()
    except Exception:
        kind = ""
    if "v7" in kind:                        # 64 MiB VMEM / TC, 2 TCs per chip
        return 48 << 20, 36 << 20, 2
    if "v6" in kind or "trillium" in kind:  # 128 MiB VMEM, 1 TC
        return 100 << 20, 80 << 20, 1
    if "v5" in kind:                        # v5e: 128 MiB VMEM, 1 TC
        return 96 << 20, 76 << 20, 1
    return 32 << 20, 24 << 20, 1            # unknown generation: stay conservative


def _per_step_vmem_bytes(tb, S, Dk, Dv, H, in_dtype, out_dtype, masked, write_attn):
    # Double-buffered pipeline tiles (inputs + outputs), padded to (sublane, 128).
    bufs = (_padded_tile_bytes(tb, S * Dk, in_dtype)
            + _padded_tile_bytes(tb, Dk * S, in_dtype)
            + _padded_tile_bytes(tb, S * Dv, in_dtype)
            + _padded_tile_bytes(tb, S * Dv, out_dtype))
    if write_attn:
        bufs += _padded_tile_bytes(tb, S * S, out_dtype)
    if masked:
        bufs += _padded_tile_bytes(max(tb // H, 1), S * S, jnp.float32)
    total = 2 * bufs
    # Rough bound on f32 in-kernel intermediates (scores / exp / weights + reshaped operands).
    total += 4 * tb * _round_up(S, 8) * _round_up(S, 128) * 4
    total += 3 * tb * _round_up(S, 8) * _round_up(max(Dk, Dv), 128) * 4
    return total


def _pick_block_batch(BH, B, H, masked, row_mult, budget, cores, step_bytes):
    """Largest legal TB (divisor of BH) whose padded, double-buffered tiles fit the
    VMEM budget.  Only on 2-TC chips do we additionally prefer an even step count."""
    def valid(tb):
        if BH % tb:
            return False
        if tb != BH and tb % row_mult:          # (sublane,128) rule on the block rows
            return False
        if masked:
            if tb % H:                          # mask block must cover whole batches
                return False
            tbb = tb // H
            if tbb != B and tbb % 8:            # mask is f32 -> 8-row sublane rule
                return False
        return True

    cands = [t for t in range(1, BH + 1) if valid(t)]   # always contains BH
    fits = [t for t in cands if step_bytes(t) <= budget]
    if not fits:
        # Nothing fits the budget; take the smallest legal block.
        # TODO(synk): also tile the S (row) dimension for very large S / BH.
        return min(cands)
    if cores > 1:
        even = [t for t in fits if (BH // t) >= 2 and (BH // t) % 2 == 0]
        if even:
            return max(even)
    return max(fits)


# ---------------------------------------------------------------------------
# Kernel
# ---------------------------------------------------------------------------

def _make_kernel(S, Dk, Dv, H, scale, mxu_dtype, masked, write_attn):
    def kernel(*refs):
        it = iter(refs)
        q_ref, k_ref, v_ref = next(it), next(it), next(it)
        mask_ref = next(it) if masked else None
        out_ref = next(it)
        attn_ref = next(it) if write_attn else None

        tb = q_ref.shape[0]
        cdt = mxu_dtype if mxu_dtype is not None else q_ref.dtype

        q = q_ref[...].reshape(tb, S, Dk)
        k = k_ref[...].reshape(tb, Dk, S)
        v = v_ref[...].reshape(tb, S, Dv)

        # Fold the 1/sqrt(Dk) scale into q (S*Dk multiplies instead of S*S).
        qs = (q * jnp.asarray(scale, dtype=q.dtype)).astype(cdt)
        scores = jnp.einsum('bsd,bdt->bst', qs, k.astype(cdt),
                            preferred_element_type=jnp.float32)

        if masked:
            nb = mask_ref.shape[0]                        # batches in this block (tb // H)
            m = mask_ref[...].reshape(nb, 1, S, S)        # broadcast over heads in-register
            scores = jnp.where(m == 0, jnp.float32(-1e9),
                               scores.reshape(nb, H, S, S)).reshape(tb, S, S)

        # Numerically stable softmax in f32; one reciprocal per row instead of S divides.
        row_max = jnp.max(scores, axis=-1, keepdims=True)
        e = jnp.exp(scores - row_max)
        inv = pl.reciprocal(jnp.sum(e, axis=-1, keepdims=True), approx=False)
        w = e * inv

        out = jnp.einsum('bst,btd->bsd', w.astype(cdt), v.astype(cdt),
                         preferred_element_type=jnp.float32)
        out_ref[...] = out.reshape(tb, S * Dv).astype(out_ref.dtype)
        if write_attn:
            attn_ref[...] = w.reshape(tb, S * S).astype(attn_ref.dtype)

    return kernel


# ---------------------------------------------------------------------------
# Wrapper
# ---------------------------------------------------------------------------

def p_scaled_dot_product_attention(q, k, v, mask=None, *, return_attn=True, mxu_dtype=None):
    """Pallas implementation of p_scaledotproductattention.forward.

    q: (B, H, S, Dk)   k: (B, H, Dk, S)   v: (B, H, S, Dv)
    mask: optional (B, S, S); positions where mask == 0 are filled with -1e9 before softmax.
    Returns (output (B, H, S, Dv), attn_weights (B, H, S, S) or None).
    """
    B, H, S, Dk = q.shape
    assert k.shape == (B, H, Dk, S)
    Dv = v.shape[-1]
    assert v.shape == (B, H, S, Dv)

    BH = B * H
    scale = float(Dk) ** -0.5
    masked = mask is not None

    # Lane-dense 2-D views at the pallas_call boundary (contiguous reshapes: free).
    qf = q.reshape(BH, S * Dk)
    kf = k.reshape(BH, Dk * S)
    vf = v.reshape(BH, S * Dv)

    vmem_limit, budget, cores = _tpu_generation()
    row_mult = _sublane_multiple(q.dtype)
    step_bytes = functools.partial(_per_step_vmem_bytes, S=S, Dk=Dk, Dv=Dv, H=H,
                                   in_dtype=q.dtype, out_dtype=q.dtype,
                                   masked=masked, write_attn=return_attn)
    TB = _pick_block_batch(BH, B, H, masked, row_mult, budget, cores, step_bytes)
    grid = (BH // TB,)

    in_arrays = [qf, kf, vf]
    in_specs = [
        pl.BlockSpec((TB, S * Dk), lambda i: (i, 0)),
        pl.BlockSpec((TB, Dk * S), lambda i: (i, 0)),
        pl.BlockSpec((TB, S * Dv), lambda i: (i, 0)),
    ]
    if masked:
        # Keep the mask at (B, S*S): no H-fold broadcast in HBM; the kernel broadcasts.
        mask_f = jnp.asarray(mask).astype(jnp.float32).reshape(B, S * S)
        in_arrays.append(mask_f)
        in_specs.append(pl.BlockSpec((TB // H, S * S), lambda i: (i, 0)))

    kernel = _make_kernel(S, Dk, Dv, H, scale, mxu_dtype, masked, return_attn)

    if return_attn:
        out_shape = (jax.ShapeDtypeStruct((BH, S * Dv), q.dtype),
                     jax.ShapeDtypeStruct((BH, S * S), q.dtype))
        out_specs = (pl.BlockSpec((TB, S * Dv), lambda i: (i, 0)),
                     pl.BlockSpec((TB, S * S), lambda i: (i, 0)))
    else:
        out_shape = jax.ShapeDtypeStruct((BH, S * Dv), q.dtype)
        out_specs = pl.BlockSpec((TB, S * Dv), lambda i: (i, 0))

    result = pl.pallas_call(
        kernel,
        out_shape=out_shape,
        grid_spec=pltpu.PrefetchScalarGridSpec(
            num_scalar_prefetch=0,
            grid=grid,
            in_specs=in_specs,
            out_specs=out_specs),
        compiler_params=pltpu.CompilerParams(
            dimension_semantics=("parallel",),
            vmem_limit_bytes=int(vmem_limit)),
    )(*in_arrays)

    if return_attn:
        out, attn = result
        return out.reshape(B, H, S, Dv), attn.reshape(B, H, S, S)
    return result.reshape(B, H, S, Dv), None


# ---------------------------------------------------------------------------
# Reference + self-test
# ---------------------------------------------------------------------------

def _reference(q, k, v, mask=None):
    scale = float(q.shape[-1]) ** -0.5
    scores = jnp.einsum('bhsd,bhdt->bhst', q, k) * scale
    if mask is not None:
        scores = jnp.where(mask[:, None] == 0, jnp.float32(-1e9), scores)
    w = jax.nn.softmax(scores, axis=-1)
    return jnp.einsum('bhst,bhtd->bhsd', w, v), w


if __name__ == "__main__":
    key = jax.random.PRNGKey(0)
    # d_model=32, n_heads=4 -> head_dim=8; seq (= patch_num*feat_dim) = 16.
    B, H, S, Dk, Dv = 2, 4, 16, 8, 8
    kq, kk, kv, km = jax.random.split(key, 4)
    q = jax.random.normal(kq, (B, H, S, Dk), dtype=jnp.float32)
    k = jax.random.normal(kk, (B, H, Dk, S), dtype=jnp.float32)
    v = jax.random.normal(kv, (B, H, S, Dv), dtype=jnp.float32)

    # No-mask path (module default).
    out, attn = p_scaled_dot_product_attention(q, k, v)
    jax.block_until_ready((out, attn))
    ref_out, ref_attn = _reference(q, k, v)
    assert jnp.allclose(out, ref_out, atol=2e-5, rtol=2e-5), "unmasked output mismatch"
    assert jnp.allclose(attn, ref_attn, atol=2e-5, rtol=2e-5), "unmasked weights mismatch"

    # Masked path (mask==0 positions filled with -1e9 before softmax).
    mask = (jax.random.uniform(km, (B, S, S)) > 0.3).astype(jnp.int32)
    out_m, attn_m = p_scaled_dot_product_attention(q, k, v, mask)
    jax.block_until_ready((out_m, attn_m))
    ref_out_m, ref_attn_m = _reference(q, k, v, mask)
    assert jnp.allclose(out_m, ref_out_m, atol=2e-5, rtol=2e-5), "masked output mismatch"
    assert jnp.allclose(attn_m, ref_attn_m, atol=2e-5, rtol=2e-5), "masked weights mismatch"

    # Output-only path (skips the (BH, S*S) weight writeback).
    out_o, _ = p_scaled_dot_product_attention(q, k, v, return_attn=False)
    jax.block_until_ready(out_o)
    assert jnp.allclose(out_o, ref_out, atol=2e-5, rtol=2e-5), "return_attn=False mismatch"

    print("KERNEL_OK")
</pallas_src>

<mosaic_0001>
module attributes {stable_mosaic.version = 11 : i64} {
  func.func @kernel(%arg0: i32, %arg1: memref<8x128xf32, #tpu.memory_space<vmem>>, %arg2: memref<8x128xf32, #tpu.memory_space<vmem>>, %arg3: memref<8x128xf32, #tpu.memory_space<vmem>>, %arg4: memref<8x128xf32, #tpu.memory_space<vmem>>, %arg5: memref<8x256xf32, #tpu.memory_space<vmem>>) attributes {dimension_semantics = [#tpu.dimension_semantics<parallel>], iteration_bounds = array<i64: 1>, scalar_prefetch = 0 : i64, scratch_operands = 0 : i64, tpu.core_type = #tpu.core_type<tc>, window_params = [{transform_indices = @transform_0, window_bounds = array<i64: 8, 128>}, {transform_indices = @transform_1, window_bounds = array<i64: 8, 128>}, {transform_indices = @transform_2, window_bounds = array<i64: 8, 128>}, {transform_indices = @transform_3, window_bounds = array<i64: 8, 128>}, {transform_indices = @transform_4, window_bounds = array<i64: 8, 256>}]} {
    %c0 = arith.constant 0 : index
    %c0_0 = arith.constant 0 : index
    %0 = vector.load %arg1[%c0, %c0_0] : memref<8x128xf32, #tpu.memory_space<vmem>>, vector<8x128xf32>
    %1 = vector.shape_cast %0 : vector<8x128xf32> to vector<8x16x8xf32>
    %c0_1 = arith.constant 0 : index
    %c0_2 = arith.constant 0 : index
    %2 = vector.load %arg2[%c0_1, %c0_2] : memref<8x128xf32, #tpu.memory_space<vmem>>, vector<8x128xf32>
    %3 = vector.shape_cast %2 : vector<8x128xf32> to vector<8x8x16xf32>
    %c0_3 = arith.constant 0 : index
    %c0_4 = arith.constant 0 : index
    %4 = vector.load %arg3[%c0_3, %c0_4] : memref<8x128xf32, #tpu.memory_space<vmem>>, vector<8x128xf32>
    %5 = vector.shape_cast %4 : vector<8x128xf32> to vector<8x16x8xf32>
    %cst = arith.constant 0.353553385 : f32
    %6 = vector.broadcast %cst : f32 to vector<8x16x8xf32>
    %7 = arith.mulf %1, %6 : vector<8x16x8xf32>
    "tpu.trace_start"() <{level = 10 : i32, message = "bsd,bdt->bst"}> : () -> ()
    %cst_5 = arith.constant dense<0.000000e+00> : vector<8x16x16xf32>
    %8 = tpu.matmul %7, %3, %cst_5 {dimension_numbers = #tpu.dot_dimension_numbers<[2], [1], [1], [2], [0, 0, 0, 1, 1, 2], [0], [0]>} : vector<8x16x8xf32>, vector<8x8x16xf32>, vector<8x16x16xf32> -> vector<8x16x16xf32>
    "tpu.trace_stop"() : () -> ()
    %cst_6 = arith.constant dense<0xFF800000> : vector<8x16xf32>
    %9 = vector.multi_reduction <maximumf>, %8, %cst_6 [2] : vector<8x16x16xf32> to vector<8x16xf32>
    %10 = vector.shape_cast %9 : vector<8x16xf32> to vector<8x16x1xf32>
    %11 = vector.broadcast %10 : vector<8x16x1xf32> to vector<8x16x16xf32>
    %12 = arith.subf %8, %11 : vector<8x16x16xf32>
    %13 = math.exp %12 : vector<8x16x16xf32>
    %cst_7 = arith.constant dense<0.000000e+00> : vector<8x16xf32>
    %14 = vector.multi_reduction <add>, %13, %cst_7 [2] : vector<8x16x16xf32> to vector<8x16xf32>
    %15 = vector.shape_cast %14 : vector<8x16xf32> to vector<8x16x1xf32>
    %16 = tpu.reciprocal %15 : vector<8x16x1xf32> -> vector<8x16x1xf32>
    %17 = vector.broadcast %16 : vector<8x16x1xf32> to vector<8x16x16xf32>
    %18 = arith.mulf %13, %17 : vector<8x16x16xf32>
    "tpu.trace_start"() <{level = 10 : i32, message = "bst,btd->bsd"}> : () -> ()
    %cst_8 = arith.constant dense<0.000000e+00> : vector<8x16x8xf32>
    %19 = tpu.matmul %18, %5, %cst_8 {dimension_numbers = #tpu.dot_dimension_numbers<[2], [1], [1], [2], [0, 0, 0, 1, 1, 2], [0], [0]>} : vector<8x16x16xf32>, vector<8x16x8xf32>, vector<8x16x8xf32> -> vector<8x16x8xf32>
    "tpu.trace_stop"() : () -> ()
    %20 = vector.shape_cast %19 : vector<8x16x8xf32> to vector<8x128xf32>
    %c0_9 = arith.constant 0 : index
    %c0_10 = arith.constant 0 : index
    %21 = vector.load %arg4[%c0_9, %c0_10] : memref<8x128xf32, #tpu.memory_space<vmem>>, vector<8x128xf32>
    tpu.vector_store %arg4[%c0_9, %c0_10], %20 {strides = array<i32>} : memref<8x128xf32, #tpu.memory_space<vmem>>, vector<8x128xf32>,
    %22 = vector.shape_cast %18 : vector<8x16x16xf32> to vector<8x256xf32>
    %c0_11 = arith.constant 0 : index
    %c0_12 = arith.constant 0 : index
    %23 = vector.load %arg5[%c0_11, %c0_12] : memref<8x256xf32, #tpu.memory_space<vmem>>, vector<8x256xf32>
    tpu.vector_store %arg5[%c0_11, %c0_12], %22 {strides = array<i32>} : memref<8x256xf32, #tpu.memory_space<vmem>>, vector<8x256xf32>,
    return
  }
  func.func @transform_0(%arg0: i32) -> (i32, i32) {
    %c0_i32 = arith.constant 0 : i32
    %c0_i32_0 = arith.constant 0 : i32
    return %arg0, %c0_i32 : i32, i32
  }
  func.func @transform_1(%arg0: i32) -> (i32, i32) {
    %c0_i32 = arith.constant 0 : i32
    %c0_i32_0 = arith.constant 0 : i32
    return %arg0, %c0_i32 : i32, i32
  }
  func.func @transform_2(%arg0: i32) -> (i32, i32) {
    %c0_i32 = arith.constant 0 : i32
    %c0_i32_0 = arith.constant 0 : i32
    return %arg0, %c0_i32 : i32, i32
  }
  func.func @transform_3(%arg0: i32) -> (i32, i32) {
    %c0_i32 = arith.constant 0 : i32
    %c0_i32_0 = arith.constant 0 : i32
    return %arg0, %c0_i32 : i32, i32
  }
  func.func @transform_4(%arg0: i32) -> (i32, i32) {
    %c0_i32 = arith.constant 0 : i32
    %c0_i32_0 = arith.constant 0 : i32
    return %arg0, %c0_i32 : i32, i32
  }
}

</mosaic_0001>

<bundles_post_ra>
// kernel: tpu_custom_call.1
= control target key start
LH: loop header
LB: loop body
LE: loop exit
PB: predicated region body
PF: predicated region fallthrough
CT: control target
= control target key end

     0   :  { %10 = vsyncpa [#allocation3], 0  ;;  %s4325_s0 = inlined_call_operand.hbm [shape: f32[8,128], index: 0, kind: input, shape index: {}]   ;;  %s4326_s1 = inlined_call_operand.hbm [shape: f32[8,128], index: 1, kind: input, shape index: {}]   ;;  %s4327_s2 = inlined_call_operand.hbm [shape: f32[8,128], index: 2, kind: input, shape index: {}]   ;;  %s4328_s3 = inlined_call_operand.hbm [shape: f32[8,128], index: 3, kind: output, shape index: {0}]   ;;  %s4329_s4 = inlined_call_operand.hbm [shape: f32[8,256], index: 4, kind: output, shape index: {1}]  }
   0x1   :  { %11 = vsyncpa [#allocation6], 0 }
   0x2   :  { %12 = vsyncpa [#allocation4], 0 }
   0x3   :  { %13 = vsyncpa [#allocation10], 0  ;;  %s3495_s15 = smov [#allocation5]   ;;  %s3496_s17 = smov [#allocation2]  }
   0x4   :  { %s30_s16 = sshll.u32 %s3495_s15, 4  ;;  %s20_s18 = sshll.u32 %s3496_s17, 4  ;;  %s31_s16 = int_to_ptr.vmem [resolvable:$true] %s30_s16  ;;  %s21_s18 = int_to_ptr.vmem [resolvable:$true] %s20_s18 }
   0x5   :  { %s3377_s21 = scalar_lea.hbm %s4326_s1, 128 }
   0x6   :  { %p3378_p0 = scmp.ne.s32.totalorder %s4326_s1, %s3377_s21  ;;  %p3381_p1 = scmp.lt.u32.totalorder %s3377_s21, %s4326_s1 }
   0x8   :  { %p3383_p2 = pnand %p3381_p1, %p3378_p0 }
   0xa   :  { %3386 = shalt.err (!%p3383_p2)
}
   0xb   :  { %s3387_s26 = scalar_lea.vmem %s31_s16, 128  ;;  %p3392_p4 = scmp.lt.s32.totalorder %s31_s16, %s31_s16 }
   0xc   :  { %p3388_p3 = scmp.ne.s32.totalorder %s31_s16, %s3387_s26  ;;  %p3393_p5 = scmp.lt.s32.totalorder %s3387_s26, %s3387_s26 }
   0xe   :  { %p3394_p6 = por %p3393_p5, %p3392_p4 }
  0x10   :  { %p3395_p7 = pnand %p3394_p6, %p3388_p3 }
  0x12   :  { %3398 = shalt.err (!%p3395_p7)
}
  0x13   :  { %33 = dma.hbm_to_vmem [thread:$0]  %s4326_s1, 128, %s31_s16, [#allocation6]  }
  0x14   :  { %s3399_s5 = scalar_lea.hbm %s4325_s0, 128 }
  0x15   :  { %p3400_p8 = scmp.ne.s32.totalorder %s4325_s0, %s3399_s5  ;;  %p3403_p9 = scmp.lt.u32.totalorder %s3399_s5, %s4325_s0 }
  0x17   :  { %p3405_p10 = pnand %p3403_p9, %p3400_p8 }
  0x19   :  { %3408 = shalt.err (!%p3405_p10)
}
  0x1a   :  { %s3409_s10 = scalar_lea.vmem %s21_s18, 128  ;;  %p3414_p12 = scmp.lt.s32.totalorder %s21_s18, %s21_s18 }
  0x1b   :  { %p3410_p11 = scmp.ne.s32.totalorder %s21_s18, %s3409_s10  ;;  %p3415_p13 = scmp.lt.s32.totalorder %s3409_s10, %s3409_s10 }
  0x1d   :  { %p3416_p0 = por %p3415_p13, %p3414_p12 }
  0x1f   :  { %p3417_p1 = pnand %p3416_p0, %p3410_p11 }
  0x21   :  { %3420 = shalt.err (!%p3417_p1)
}
  0x22   :  { %23 = dma.hbm_to_vmem [thread:$0]  %s4325_s0, 128, %s21_s18, [#allocation3]  }
  0x23   :  { %s3497_s12 = smov [#allocation7]   ;;  %s3421_s16 = scalar_lea.hbm %s4327_s2, 128 }
  0x24   :  { %s40_s13 = sshll.u32 %s3497_s12, 4  ;;  %p3422_p2 = scmp.ne.s32.totalorder %s4327_s2, %s3421_s16  ;;  %s41_s13 = int_to_ptr.vmem [resolvable:$true] %s40_s13 }
  0x25   :  { %p3425_p3 = scmp.lt.u32.totalorder %s3421_s16, %s4327_s2 }
  0x27   :  { %p3427_p4 = pnand %p3425_p3, %p3422_p2 }
  0x29   :  { %3430 = shalt.err (!%p3427_p4)
}
  0x2a   :  { %s3431_s22 = scalar_lea.vmem %s41_s13, 128  ;;  %p3436_p6 = scmp.lt.s32.totalorder %s41_s13, %s41_s13 }
  0x2b   :  { %p3432_p5 = scmp.ne.s32.totalorder %s41_s13, %s3431_s22  ;;  %p3437_p7 = scmp.lt.s32.totalorder %s3431_s22, %s3431_s22 }
  0x2d   :  { %p3438_p8 = por %p3437_p7, %p3436_p6 }
  0x2f   :  { %p3439_p9 = pnand %p3438_p8, %p3432_p5 }
  0x31   :  { %3442 = shalt.err (!%p3439_p9)
}
  0x32   :  { %43 = dma.hbm_to_vmem [thread:$0]  %s4327_s2, 128, %s41_s13, [#allocation6]  }
  0x33   :  { %3487 = dma.done.wait [#allocation3], 128  }
  0x34   :  { %3488 = vsyncadd [#allocation3], 4294967168 }
  0x35   :  { %3489 = dma.done.wait [#allocation6], 256  }
  0x36   :  { %3490 = vsyncadd [#allocation6], 4294967040  ;;  %v3578_v0 = vld [vmem:[#allocation2] sm:$0xff]  ;;  %s3498_s23 = smov 104   ;;  %s3499_s24 = smov 120   ;;  %v3608_v1 = vld [vmem:[#allocation5] sm:$0xff]  ;;  %v105_v7 = vlaneseq }
  0x37   :  { %61 = vrot.lane.b32.xlu1 %v3578_v0, %s3498_s23  ;;  %55 = vrot.lane.b32.xlu0 %v3578_v0, %s3499_s24  ;;  %s3500_s25 = smov 96   ;;  %s3501_s26 = smov 112   ;;  %v3626_v2 = vld [vmem:[#allocation7] sm:$0xff]  ;;  %v3513_v5 = vmov 1983009808   ;;  %vm866_vm0 = vcmask 64512  }
  0x38   :  { %s3502_s2 = smov 80   ;;  %s3503_s27 = smov 88   ;;  %v103_v6 = vunpack.c.l.s4 %v3513_v5  ;;  %v106_v11 = vshrl.u32 %v105_v7, 7  ;;  %v3514_v12 = vmov 1934713408   ;;  %vm1515_vm1 = vcmask 130048  }
  0x39   :  { %s3504_s28 = smov 64   ;;  %s3505_s29 = smov 72   ;;  %v167_v13 = vunpack.c.l.s4 %v3514_v12  ;;  %vm2674_vm2 = vcmask 195584   ;;  %vm2678_vm3 = vcmask 326656   ;;  %vm2676_vm4 = vcmask 261120  }
  0x3a   :  { %s3506_s30 = smov 48   ;;  %s3507_s5 = smov 56   ;;  %v104_v10 = vunpack.c.0.s8 %v103_v6  ;;  %vm2680_vm5 = vcmask 392192   ;;  %vm2682_vm6 = vcmask 457728   ;;  %vm2684_vm7 = vcmask 523264  }
  0x3b   :  { %64 = vrot.lane.b32.xlu1 %v3578_v0, %s3500_s25  ;;  %58 = vrot.lane.b32.xlu0 %v3578_v0, %s3501_s26  ;;  %s3508_s6 = smov 32   ;;  %s3509_s7 = smov 40   ;;  %v168_v19 = vunpack.c.0.s8 %v167_v13  ;;  %vm2686_vm8 = vcmask 588800   ;;  %vm2688_vm9 = vcmask 654336   ;;  %vm2692_vm10 = vcmask 785408  }
  0x3c   :  { %s3510_s8 = smov 16   ;;  %s3511_s9 = smov 24   ;;  %v3647_v17 = vsub.s32 %v104_v10, %v106_v11  ;;  %vm2690_vm11 = vcmask 719872   ;;  %vm2696_vm12 = vcmask 916480   ;;  %vm2694_vm13 = vcmask 850944  }
  0x3d   :  { %s3512_s10 = smov 8   ;;  %v3653_v26 = vsub.s32 %v168_v19, %v106_v11  ;;  %s3515_s1 = smov [#allocation8]   ;;  %vm2698_vm14 = vcmask 982016  }
  0x3e   :  { %s3051_s11 = sshll.u32 %s3515_s1, 4  ;;  %s3516_s12 = smov [#allocation9]   ;;  %s3052_s11 = int_to_ptr.vmem [resolvable:$true] %s3051_s11 }
  0x3f   :  { %70 = vrot.lane.b32.xlu1 %v3578_v0, %s3502_s2  ;;  %67 = vrot.lane.b32.xlu0 %v3578_v0, %s3503_s27  ;;  %s3061_s13 = sshll.u32 %s3516_s12, 4  ;;  %s3443_s14 = scalar_lea.vmem %s3052_s11, 128  ;;  %s3062_s13 = int_to_ptr.vmem [resolvable:$true] %s3061_s13 }
  0x40   :  { %p3444_p10 = scmp.ne.s32.totalorder %s3052_s11, %s3443_s14  ;;  %p3448_p11 = scmp.lt.s32.totalorder %s3052_s11, %s3052_s11 }
  0x41   :  { %p3449_p12 = scmp.lt.s32.totalorder %s3443_s14, %s3443_s14 }
  0x43   :  { %76 = vrot.lane.b32.xlu1 %v3578_v0, %s3504_s28  ;;  %73 = vrot.lane.b32.xlu0 %v3578_v0, %s3505_s29  ;;  %p3450_p13 = por %p3449_p12, %p3448_p11 }
  0x45   :  { %p3451_p0 = pnand %p3450_p13, %p3444_p10 }
  0x47   :  { %82 = vrot.lane.b32.xlu1 %v3578_v0, %s3506_s30  ;;  %79 = vrot.lane.b32.xlu0 %v3578_v0, %s3507_s5 }
  0x4b   :  { %88 = vrot.lane.b32.xlu1 %v3578_v0, %s3508_s6  ;;  %85 = vrot.lane.b32.xlu0 %v3578_v0, %s3509_s7 }
  0x4f   :  { %94 = vrot.lane.b32.xlu1 %v3578_v0, %s3510_s8  ;;  %91 = vrot.lane.b32.xlu0 %v3578_v0, %s3511_s9 }
  0x53   :  { %374 = vrot.lane.b32.xlu1 %v3608_v1, %s3501_s26  ;;  %97 = vrot.lane.b32.xlu0 %v3578_v0, %s3512_s10 }
  0x57   :  { %380 = vrot.lane.b32.xlu1 %v3608_v1, %s3502_s2  ;;  %377 = vrot.lane.b32.xlu0 %v3608_v1, %s3500_s25 }
  0x5b   :  { %386 = vrot.lane.b32.xlu1 %v3608_v1, %s3506_s30  ;;  %383 = vrot.lane.b32.xlu0 %v3608_v1, %s3504_s28 }
  0x5f   :  { %392 = vrot.lane.b32.xlu1 %v3608_v1, %s3510_s8  ;;  %389 = vrot.lane.b32.xlu0 %v3608_v1, %s3508_s6 }
  0x63   :  { %533 = vrot.lane.b32.xlu1 %v3626_v2, %s3499_s24  ;;  %536 = vrot.lane.b32.xlu0 %v3626_v2, %s3501_s26 }
  0x67   :  { %539 = vrot.lane.b32.xlu1 %v3626_v2, %s3498_s23  ;;  %545 = vrot.lane.b32.xlu0 %v3626_v2, %s3503_s27 }
  0x6b   :  { %542 = vrot.lane.b32.xlu1 %v3626_v2, %s3500_s25  ;;  %551 = vrot.lane.b32.xlu0 %v3626_v2, %s3505_s29 }
  0x6f   :  { %548 = vrot.lane.b32.xlu1 %v3626_v2, %s3502_s2  ;;  %557 = vrot.lane.b32.xlu0 %v3626_v2, %s3507_s5 }
  0x73   :  { %554 = vrot.lane.b32.xlu1 %v3626_v2, %s3504_s28 }
  0xa9   :  { %v62_v3 = vpop.permute.xlu1 %61  ;;  %v56_v4 = vpop.permute.xlu0 %55 }
  0xaa   :  { %v116_v18 = vcombine.low %v56_v4, %v62_v3  ;;  %v117_v45 = vcombine.high %v56_v4, %v62_v3 }
  0xac   :  { %v124_v24 = vrot.slane %v116_v18, %v3647_v17  ;;  %v131_v52 = vrot.slane %v117_v45, %v3647_v17 }
  0xad   :  { %v65_v8 = vpop.permute.xlu1 %64  ;;  %v59_v9 = vpop.permute.xlu0 %58 }
  0xae   :  { %v100_v14 = vcombine.low %v3578_v0, %v59_v9  ;;  %v101_v43 = vcombine.high %v3578_v0, %v59_v9 }
  0xb0   :  { %v108_v20 = vrot.slane %v100_v14, %v3647_v17  ;;  %v115_v49 = vrot.slane %v101_v43, %v3647_v17 }
  0xb1   :  { %v71_v15 = vpop.permute.xlu1 %70  ;;  %v68_v16 = vpop.permute.xlu0 %67 }
  0xb2   :  { %v132_v21 = vcombine.low %v65_v8, %v71_v15  ;;  %v164_v27 = vcombine.low %v108_v20, %v124_v24  ;;  %v133_v46 = vcombine.high %v65_v8, %v71_v15  ;;  %v165_v55 = vcombine.high %v108_v20, %v124_v24 }
  0xb3   :  { %v180_v60 = vcombine.low %v115_v49, %v131_v52  ;;  %v181_v61 = vcombine.high %v115_v49, %v131_v52 }
  0xb4   :  { %v140_v28 = vrot.slane %v132_v21, %v3647_v17  ;;  %v172_v33 = vrot.slane %v164_v27, %v3653_v26  ;;  %v147_v53 = vrot.slane %v133_v46, %v3647_v17  ;;  %v3689_v8 = vrot.slane %v165_v55, %v3653_v26 }
  0xb5   :  { %v3650_v22 = vpop.permute.xlu1 %76  ;;  %v74_v23 = vpop.permute.xlu0 %73  ;;  %v3694_v13 = vrot.slane %v180_v60, %v3653_v26  ;;  %v3697_v14 = vrot.slane %v181_v61, %v3653_v26 }
  0xb6   :  { %v148_v25 = vcombine.low %v68_v16, %v74_v23  ;;  %v149_v44 = vcombine.high %v68_v16, %v74_v23 }
  0xb8   :  { %v156_v29 = vrot.slane %v148_v25, %v3647_v17  ;;  %v163_v50 = vrot.slane %v149_v44, %v3647_v17 }
  0xb9   :  { %v83_v30 = vpop.permute.xlu1 %82  ;;  %v3657_v31 = vpop.permute.xlu0 %79 }
  0xba   :  { %v196_v32 = vcombine.low %v140_v28, %v156_v29  ;;  %v197_v54 = vcombine.high %v140_v28, %v156_v29  ;;  %v212_v62 = vcombine.low %v147_v53, %v163_v50  ;;  %v236_v63 = vcombine.low %v3650_v22, %v83_v30 }
  0xbb   :  { %v213_v6 = vcombine.high %v147_v53, %v163_v50  ;;  %v237_v7 = vcombine.high %v3650_v22, %v83_v30 }
  0xbc   :  { %v204_v34 = vrot.slane %v196_v32, %v3653_v26  ;;  %v3685_v5 = vrot.slane %v197_v54, %v3653_v26  ;;  %v3700_v15 = vrot.slane %v212_v62, %v3653_v26  ;;  %v244_v16 = vrot.slane %v236_v63, %v3647_v17 }
  0xbd   :  { %v3661_v35 = vpop.permute.xlu1 %88  ;;  %v3663_v36 = vpop.permute.xlu0 %85  ;;  %v3706_v22 = vrot.slane %v213_v6, %v3653_v26  ;;  %v3709_v23 = vrot.slane %v237_v7, %v3647_v17 }
  0xbe   :  { %v228_v37 = vcombine.low %v172_v33, %v204_v34  ;;  %v229_v38 = vcombine.high %v172_v33, %v204_v34  ;;  %v252_v56 = vcombine.low %v3657_v31, %v3663_v36  ;;  %v253_v24 = vcombine.high %v3657_v31, %v3663_v36 }
  0xbf   :  { %v230_v25 = vcombine.low %v3689_v8, %v3685_v5  ;;  %v231_v62 = vcombine.high %v3689_v8, %v3685_v5  ;;  %v232_v63 = vcombine.low %v3694_v13, %v3700_v15 }
  0xc0   :  { %v850_v39 = vmul.f32 0.35355338, %v228_v37  ;;  %v852_v40 = vmul.f32 0.35355338, %v229_v38  ;;  %v260_v9 = vrot.slane %v252_v56, %v3647_v17  ;;  %v3726_v44 = vrot.slane %v253_v24, %v3647_v17 }
  0xc1   :  { %v3665_v41 = vpop.permute.xlu1 %94  ;;  %v92_v42 = vpop.permute.xlu0 %91  ;;  %v854_v24 = vmul.f32 0.35355338, %v230_v25 }
  0xc2   :  { %3165 = vmatprep.mubr.msk.f32.mxu0 %vm866_vm0, %v850_v39  ;;  %3170 = vmatprep.mubr.msk.f32.mxu1 %vm866_vm0, %v852_v40  ;;  %v268_v57 = vcombine.low %v3661_v35, %v3665_v41  ;;  %v300_v27 = vcombine.low %v244_v16, %v260_v9  ;;  %v269_v28 = vcombine.high %v3661_v35, %v3665_v41 }
  0xc3   :  { %v301_v45 = vcombine.high %v244_v16, %v260_v9 }
  0xc4   :  { %v276_v10 = vrot.slane %v268_v57, %v3647_v17  ;;  %v308_v46 = vrot.slane %v300_v27, %v3653_v26 }
  0xc5   :  { %v3670_v47 = vpop.permute.xlu1 %374  ;;  %v98_v48 = vpop.permute.xlu0 %97  ;;  %v315_v60 = vrot.slane %v301_v45, %v3653_v26 }
  0xc6   :  { %v284_v51 = vcombine.low %v92_v42, %v98_v48  ;;  %v285_v18 = vcombine.high %v92_v42, %v98_v48 }
  0xc8   :  { %v292_v0 = vrot.slane %v284_v51, %v3647_v17  ;;  %v299_v40 = vrot.slane %v285_v18, %v3647_v17 }
  0xc9   :  { %v381_v58 = vpop.permute.xlu1 %380  ;;  %v378_v59 = vpop.permute.xlu0 %377 }
  0xca   :  { %v411_v3 = vcombine.low %v3670_v47, %v381_v58  ;;  %v395_v4 = vcombine.low %v3608_v1, %v378_v59  ;;  %v332_v19 = vcombine.low %v276_v10, %v292_v0  ;;  %v412_v29 = vcombine.high %v3670_v47, %v381_v58 }
  0xcb   :  { %v396_v30 = vcombine.high %v3608_v1, %v378_v59  ;;  %v333_v31 = vcombine.high %v276_v10, %v292_v0  ;;  %v283_v47 = vrot.slane %v269_v28, %v3647_v17  ;;  %v316_v0 = vcombine.low %v3709_v23, %v3726_v44 }
  0xcc   :  { %v419_v20 = vrot.slane %v411_v3, %v3647_v17  ;;  %v403_v21 = vrot.slane %v395_v4, %v3647_v17  ;;  %v340_v36 = vrot.slane %v332_v19, %v3653_v26  ;;  %v426_v48 = vrot.slane %v412_v29, %v3647_v17 }
  0xcd   :  { %v387_v11 = vpop.permute.xlu1 %386  ;;  %v384_v12 = vpop.permute.xlu0 %383  ;;  %v410_v49 = vrot.slane %v396_v30, %v3647_v17  ;;  %v347_v52 = vrot.slane %v333_v31, %v3653_v26  ;;  %v348_v53 = vcombine.low %v283_v47, %v299_v40  ;;  %v349_v7 = vcombine.high %v283_v47, %v299_v40 }
  0xce   :  { %v459_v42 = vcombine.low %v403_v21, %v419_v20  ;;  %v460_v54 = vcombine.high %v403_v21, %v419_v20  ;;  %v364_v58 = vcombine.low %v308_v46, %v340_v36  ;;  %v365_v59 = vcombine.high %v308_v46, %v340_v36 }
  0xcf   :  { %v475_v3 = vcombine.low %v410_v49, %v426_v48  ;;  %v356_v9 = vrot.slane %v348_v53, %v3653_v26  ;;  %v366_v10 = vcombine.low %v315_v60, %v347_v52  ;;  %v367_v18 = vcombine.high %v315_v60, %v347_v52 }
  0xd0   :  { %v467_v55 = vrot.slane %v459_v42, %v3653_v26  ;;  %v851_v16 = vmul.f32 0.35355338, %v364_v58  ;;  %v853_v5 = vmul.f32 0.35355338, %v365_v59  ;;  %v476_v21 = vcombine.high %v410_v49, %v426_v48 }
  0xd1   :  { %v393_v32 = vpop.permute.xlu1 %392  ;;  %v390_v33 = vpop.permute.xlu0 %389  ;;  %v483_v27 = vrot.slane %v475_v3, %v3653_v26  ;;  %v233_v28 = vcombine.high %v3694_v13, %v3700_v15  ;;  %v317_v29 = vcombine.high %v3709_v23, %v3726_v44  ;;  %v324_v30 = vrot.slane %v316_v0, %v3653_v26 }
  0xd2   :  { %v443_v34 = vcombine.low %v387_v11, %v393_v32  ;;  %v444_v37 = vcombine.high %v387_v11, %v393_v32  ;;  %v427_v38 = vcombine.low %v384_v12, %v390_v33  ;;  %v428_v39 = vcombine.high %v384_v12, %v390_v33 }
  0xd3   :  { %v474_v11 = vrot.slane %v460_v54, %v3653_v26  ;;  %v363_v32 = vrot.slane %v349_v7, %v3653_v26  ;;  %v856_v33 = vmul.f32 0.35355338, %v231_v62  ;;  %v855_v13 = vmul.f32 0.35355338, %v366_v10 }
  0xd4   :  { %v451_v43 = vrot.slane %v443_v34, %v3647_v17  ;;  %v458_v35 = vrot.slane %v444_v37, %v3647_v17  ;;  %v435_v41 = vrot.slane %v427_v38, %v3647_v17  ;;  %v442_v1 = vrot.slane %v428_v39, %v3647_v17 }
  0xd5   :  { %v368_v38 = vcombine.low %v324_v30, %v356_v9  ;;  %v369_v39 = vcombine.high %v324_v30, %v356_v9  ;;  %v857_v15 = vmul.f32 0.35355338, %v367_v18  ;;  %v858_v23 = vmul.f32 0.35355338, %v232_v63  ;;  %v3774_v49 = vpop.permute.xlu1 %533 }
  0xd6   :  { %v492_v50 = vcombine.high %v435_v41, %v451_v43  ;;  %v491_v51 = vcombine.low %v435_v41, %v451_v43  ;;  %v507_v56 = vcombine.low %v442_v1, %v458_v35  ;;  %v508_v12 = vcombine.high %v442_v1, %v458_v35 }
  0xd7   :  { %v490_v40 = vrot.slane %v476_v21, %v3653_v26  ;;  %v331_v31 = vrot.slane %v317_v29, %v3653_v26  ;;  %v860_v36 = vmul.f32 0.35355338, %v233_v28  ;;  %v234_v42 = vcombine.low %v3697_v14, %v3706_v22 }
  0xd8   :  { %v499_v57 = vrot.slane %v491_v51, %v3653_v26  ;;  %v506_v61 = vrot.slane %v492_v50, %v3653_v26  ;;  %v515_v8 = vrot.slane %v507_v56, %v3653_v26  ;;  %v522_v37 = vrot.slane %v508_v12, %v3653_v26  ;;  %v3776_v50 = vpop.permute.xlu0 %536 }
  0xd9   :  { %v235_v43 = vcombine.high %v3697_v14, %v3706_v22  ;;  %v370_v1 = vcombine.low %v331_v31, %v363_v32  ;;  %v371_v44 = vcombine.high %v331_v31, %v363_v32  ;;  %v859_v45 = vmul.f32 0.35355338, %v368_v38  ;;  %v3780_v52 = vpop.permute.xlu1 %539 }
  0xda   :  { %v523_v4 = vcombine.low %v467_v55, %v499_v57  ;;  %v524_v6 = vcombine.high %v467_v55, %v499_v57  ;;  %v525_v19 = vcombine.low %v474_v11, %v506_v61  ;;  %v526_v20 = vcombine.high %v474_v11, %v506_v61 }
  0xdb   :  { %v527_v34 = vcombine.low %v483_v27, %v515_v8  ;;  %v528_v25 = vcombine.high %v483_v27, %v515_v8  ;;  %v529_v35 = vcombine.low %v490_v40, %v522_v37  ;;  %v530_v41 = vcombine.high %v490_v40, %v522_v37 }
  0xdc   :  { %3163 = vmatprep.subr.mxu0 %v523_v4  ;;  %3168 = vmatprep.subr.mxu1 %v524_v6  ;;  %v861_v46 = vmul.f32 0.35355338, %v369_v39  ;;  %v862_v47 = vmul.f32 0.35355338, %v234_v42  ;;  %v864_v14 = vmul.f32 0.35355338, %v235_v43  ;;  %v579_v51 = vcombine.high %v3626_v2, %v3776_v50  ;;  %v3788_v59 = vpop.permute.xlu0 %545 }
  0xdd   :  { %3164 = vmatpush3.msra.mxu0 %v523_v4  ;;  %3169 = vmatpush3.msra.mxu1 %v524_v6  ;;  %v863_v22 = vmul.f32 0.35355338, %v370_v1  ;;  %v865_v48 = vmul.f32 0.35355338, %v371_v44  ;;  %v595_v53 = vcombine.high %v3774_v49, %v3780_v52  ;;  %v3786_v58 = vpop.permute.xlu1 %542 }
  0xde   :  { %3166 = vmatmul.mubr.msk.f32.vlgmr.msra.gmra.mrb[0].mxu0 %vm866_vm0, %v851_v16  ;;  %3171 = vmatmul.mubr.msk.f32.vlgmr.msra.gmra.mrb[0].mxu1 %vm866_vm0, %v853_v5  ;;  %v593_v54 = vrot.slane %v579_v51, %v3647_v17 }
  0xdf   :  { %3173 = vmatprep.subr.mxu0 %v525_v19  ;;  %3178 = vmatprep.subr.mxu1 %v526_v20  ;;  %v609_v55 = vrot.slane %v595_v53, %v3647_v17 }
  0xe0   :  { %3174 = vmatpush3.msra.mxu0 %v525_v19  ;;  %3175 = vmatprep.mubr.msk.f32.mxu0 %vm866_vm0, %v854_v24  ;;  %v3792_v61 = vpop.permute.xlu0 %551 }
  0xe1   :  { %3179 = vmatpush3.msra.mxu1 %v526_v20  ;;  %3180 = vmatprep.mubr.msk.f32.mxu1 %vm866_vm0, %v856_v33  ;;  %v658_v56 = vcombine.low %v593_v54, %v609_v55  ;;  %v659_v57 = vcombine.high %v593_v54, %v609_v55  ;;  %v3790_v60 = vpop.permute.xlu1 %548  ;;  %v627_v63 = vcombine.high %v3788_v59, %v3792_v61 }
  0xe2   :  { %3183 = vmatprep.subr.mxu0 %v527_v34  ;;  %3188 = vmatprep.subr.mxu1 %v528_v25  ;;  %v611_v62 = vcombine.high %v3786_v58, %v3790_v60 }
  0xe3   :  { %3176 = vmatmul.mubr.msk.f32.vlgmr.msra.gmra.mrb[2].mxu0 %vm866_vm0, %v855_v13  ;;  %3181 = vmatmul.mubr.msk.f32.vlgmr.msra.gmra.mrb[2].mxu1 %vm866_vm0, %v857_v15  ;;  %v641_v3 = vrot.slane %v627_v63, %v3647_v17  ;;  %v3801_v7 = vrot.slane %v658_v56, %v3653_v26  ;;  %v3804_v9 = vrot.slane %v659_v57, %v3653_v26 }
  0xe4   :  { %3184 = vmatpush3.msra.mxu0 %v527_v34  ;;  %3189 = vmatpush3.msra.mxu1 %v528_v25  ;;  %v625_v0 = vrot.slane %v611_v62, %v3647_v17 }
  0xe5   :  { %3185 = vmatprep.mubr.msk.f32.mxu0 %vm866_vm0, %v858_v23  ;;  %3190 = vmatprep.mubr.msk.f32.mxu1 %vm866_vm0, %v860_v36 }
  0xe6   :  { %3193 = vmatprep.subr.mxu0 %v529_v35  ;;  %3198 = vmatprep.subr.mxu1 %v530_v41  ;;  %v690_v4 = vcombine.low %v625_v0, %v641_v3  ;;  %v691_v6 = vcombine.high %v625_v0, %v641_v3 }
  0xe7   :  { %3186 = vmatmul.mubr.msk.f32.vlgmr.msra.gmra.mrb[4].mxu0 %vm866_vm0, %v859_v45  ;;  %3191 = vmatmul.mubr.msk.f32.vlgmr.msra.gmra.mrb[4].mxu1 %vm866_vm0, %v861_v46 }
  0xe8   :  { %3194 = vmatpush3.msra.mxu0 %v529_v35  ;;  %3199 = vmatpush3.msra.mxu1 %v530_v41  ;;  %v3807_v10 = vrot.slane %v690_v4, %v3653_v26  ;;  %v3810_v11 = vrot.slane %v691_v6, %v3653_v26 }
  0xe9   :  { %3195 = vmatprep.mubr.msk.f32.mxu0 %vm866_vm0, %v862_v47  ;;  %3200 = vmatprep.mubr.msk.f32.mxu1 %vm866_vm0, %v864_v14 }
  0xea   :  { %v710_v12 = vcombine.low %v3801_v7, %v3807_v10  ;;  %v711_v16 = vcombine.high %v3801_v7, %v3807_v10  ;;  %v712_v5 = vcombine.low %v3804_v9, %v3810_v11  ;;  %v713_v8 = vcombine.high %v3804_v9, %v3810_v11 }
  0xeb   :  { %3196 = vmatmul.mubr.msk.f32.vlgmr.msra.gmra.mrb[6].mxu0 %vm866_vm0, %v863_v22  ;;  %3201 = vmatmul.mubr.msk.f32.vlgmr.msra.gmra.mrb[6].mxu1 %vm866_vm0, %v865_v48  ;;  %v3890_v22 = vpop.permute.xlu0 %557  ;;  %v3892_v48 = vpop.permute.xlu1 %554 }
 0x1b1   :  { %v3167_v18 = vpop.f32.mrb[0].mxu0  ;;  %v3820_v19 = vpop.f32.mrb[0].mxu1 }
 0x1b2   :  { %v3822_v20 = vpop.f32.mrb[1].mxu0  ;;  %v1020_v21 = vpop.f32.mrb[1].mxu1  ;;  %v1519_v24 = vsel %vm1515_vm1, %v3167_v18, -inf  ;;  %v1525_v30 = vsel %vm1515_vm1, %v3820_v19, -inf }
 0x1b3   :  { %1520 = vmax.xlane.f32.xlu0 %v1519_v24  ;;  %v1522_v27 = vsel %vm1515_vm1, %v1020_v21, -inf  ;;  %v1516_v38 = vsel %vm1515_vm1, %v3822_v20, -inf }
 0x1b4   :  { %1523 = vmax.xlane.f32.xlu1 %v1522_v27 }
 0x1b6   :  { %v3826_v28 = vpop.f32.mrb[2].mxu0  ;;  %v3828_v29 = vpop.f32.mrb[2].mxu1 }
 0x1b7   :  { %v3832_v32 = vpop.f32.mrb[3].mxu0  ;;  %v3834_v33 = vpop.f32.mrb[3].mxu1  ;;  %1526 = vmax.xlane.f32.xlu0 %v1525_v30  ;;  %v1531_v34 = vsel %vm1515_vm1, %v3826_v28, -inf  ;;  %v1537_v31 = vsel %vm1515_vm1, %v3828_v29, -inf }
 0x1b8   :  { %1532 = vmax.xlane.f32.xlu1 %v1531_v34  ;;  %v1528_v15 = vsel %vm1515_vm1, %v3832_v32, -inf  ;;  %v1534_v35 = vsel %vm1515_vm1, %v3834_v33, -inf }
 0x1ba   :  { %v3838_v25 = vpop.f32.mrb[4].mxu0  ;;  %v3840_v37 = vpop.f32.mrb[4].mxu1 }
 0x1bb   :  { %v3844_v39 = vpop.f32.mrb[5].mxu0  ;;  %v3846_v13 = vpop.f32.mrb[5].mxu1  ;;  %1517 = vmax.xlane.f32.xlu0 %v1516_v38  ;;  %v1543_v43 = vsel %vm1515_vm1, %v3838_v25, -inf  ;;  %v1549_v1 = vsel %vm1515_vm1, %v3840_v37, -inf }
 0x1bc   :  { %1529 = vmax.xlane.f32.xlu1 %v1528_v15  ;;  %v1540_v41 = vsel %vm1515_vm1, %v3844_v39, -inf  ;;  %v1546_v45 = vsel %vm1515_vm1, %v3846_v13, -inf }
 0x1be   :  { %v3850_v23 = vpop.f32.mrb[6].mxu0  ;;  %v3852_v40 = vpop.f32.mrb[6].mxu1 }
 0x1bf   :  { %v3856_v36 = vpop.f32.mrb[7].mxu0  ;;  %v3858_v42 = vpop.f32.mrb[7].mxu1  ;;  %1538 = vmax.xlane.f32.xlu0 %v1537_v31  ;;  %v1555_v44 = vsel %vm1515_vm1, %v3850_v23, -inf  ;;  %v1561_v47 = vsel %vm1515_vm1, %v3852_v40, -inf }
 0x1c0   :  { %1544 = vmax.xlane.f32.xlu1 %v1543_v43  ;;  %v1552_v46 = vsel %vm1515_vm1, %v3856_v36, -inf  ;;  %v1558_v14 = vsel %vm1515_vm1, %v3858_v42, -inf }
 0x1c3   :  { %1535 = vmax.xlane.f32.xlu0 %v1534_v35 }
 0x1c4   :  { %1541 = vmax.xlane.f32.xlu1 %v1540_v41 }
 0x1c7   :  { %1550 = vmax.xlane.f32.xlu0 %v1549_v1 }
 0x1c8   :  { %1556 = vmax.xlane.f32.xlu1 %v1555_v44 }
 0x1cb   :  { %1547 = vmax.xlane.f32.xlu0 %v1546_v45 }
 0x1cc   :  { %1553 = vmax.xlane.f32.xlu1 %v1552_v46 }
 0x1cf   :  { %1562 = vmax.xlane.f32.xlu0 %v1561_v47 }
 0x1d3   :  { %1559 = vmax.xlane.f32.xlu0 %v1558_v14 }
 0x1dd   :  { %560 = vrot.lane.b32.xlu1 %v3626_v2, %s3506_s30 }
 0x1e1   :  { %566 = vrot.lane.b32.xlu1 %v3626_v2, %s3508_s6 }
 0x1e5   :  { %572 = vrot.lane.b32.xlu1 %v3626_v2, %s3510_s8 }
 0x1e9   :  { %563 = vrot.lane.b32.xlu0 %v3626_v2, %s3509_s7 }
 0x1ed   :  { %569 = vrot.lane.b32.xlu0 %v3626_v2, %s3511_s9 }
 0x1f1   :  { %575 = vrot.lane.b32.xlu0 %v3626_v2, %s3512_s10 }
 0x240   :  { %v1521_v51 = vpop.xlane.xlu0 %1520 }
 0x241   :  { %v1565_v53 = vsub.f32 %v3167_v18, %v1521_v51  ;;  %v1524_v54 = vpop.xlane.xlu1 %1523 }
 0x242   :  { %v1566_v56 = vsub.f32 %v1020_v21, %v1524_v54 }
 0x243   :  { %v1582_v55 = vmul.f32 1.442695, %v1565_v53 }
 0x244   :  { %v1527_v57 = vpop.xlane.xlu0 %1526  ;;  %v1584_v0 = vmul.f32 1.442695, %v1566_v56 }
 0x245   :  { %3313 = vpow2.f32 %v1582_v55  ;;  %v1567_v62 = vsub.f32 %v3820_v19, %v1527_v57  ;;  %v1533_v63 = vpop.xlane.xlu1 %1532 }
 0x246   :  { %v1569_v4 = vsub.f32 %v3826_v28, %v1533_v63 }
 0x247   :  { %v1586_v3 = vmul.f32 1.442695, %v1567_v62 }
 0x248   :  { %v1518_v6 = vpop.xlane.xlu0 %1517  ;;  %v1590_v30 = vmul.f32 1.442695, %v1569_v4 }
 0x249   :  { %3315 = vpow2.f32 %v1586_v3  ;;  %v1564_v24 = vsub.f32 %v3822_v20, %v1518_v6  ;;  %v1530_v27 = vpop.xlane.xlu1 %1529 }
 0x24a   :  { %3317 = vpow2.f32 %v1584_v0  ;;  %v1568_v34 = vsub.f32 %v3832_v32, %v1530_v27 }
 0x24b   :  { %v1580_v18 = vmul.f32 1.442695, %v1564_v24 }
 0x24c   :  { %v1539_v21 = vpop.xlane.xlu0 %1538  ;;  %v1588_v31 = vmul.f32 1.442695, %v1568_v34 }
 0x24d   :  { %3319 = vpow2.f32 %v1580_v18  ;;  %v1571_v38 = vsub.f32 %v3828_v29, %v1539_v21  ;;  %v1545_v19 = vpop.xlane.xlu1 %1544 }
 0x24e   :  { %3321 = vpow2.f32 %v1590_v30  ;;  %v1573_v43 = vsub.f32 %v3838_v25, %v1545_v19  ;;  %v594_v19 = vcombine.low %v3774_v49, %v3780_v52  ;;  %v610_v49 = vcombine.low %v3786_v58, %v3790_v60 }
 0x24f   :  { %v3899_v15 = vpop.eup %3313  ;;  %v1594_v28 = vmul.f32 1.442695, %v1571_v38 }
 0x250   :  { %v1536_v35 = vpop.xlane.xlu0 %1535  ;;  %v1615_v20 = vsel %vm1515_vm1, %v3899_v15, 0.0  ;;  %v1598_v29 = vmul.f32 1.442695, %v1573_v43  ;;  %v618_v60 = vrot.slane %v610_v49, %v3647_v17 }
 0x251   :  { %3323 = vpow2.f32 %v1594_v28  ;;  %v1570_v41 = vsub.f32 %v3834_v33, %v1536_v35  ;;  %v1542_v32 = vpop.xlane.xlu1 %1541  ;;  %1616 = vadd.xlane.f32.xlu1 %v1615_v20 }
 0x252   :  { %3325 = vpow2.f32 %v1588_v31  ;;  %v1572_v45 = vsub.f32 %v3844_v39, %v1542_v32  ;;  %v578_v31 = vcombine.low %v3626_v2, %v3776_v50  ;;  %v626_v2 = vcombine.low %v3788_v59, %v3792_v61 }
 0x253   :  { %v3905_v1 = vpop.eup %3315  ;;  %v1592_v44 = vmul.f32 1.442695, %v1570_v41  ;;  %v602_v32 = vrot.slane %v594_v19, %v3647_v17 }
 0x254   :  { %v1551_v46 = vpop.xlane.xlu0 %1550  ;;  %v1621_v25 = vsel %vm1515_vm1, %v3905_v1, 0.0  ;;  %v3910_v47 = vpop.eup %3317  ;;  %v1596_v53 = vmul.f32 1.442695, %v1572_v45  ;;  %v634_v61 = vrot.slane %v626_v2, %v3647_v17 }
 0x255   :  { %3327 = vpow2.f32 %v1592_v44  ;;  %v1575_v14 = vsub.f32 %v3840_v37, %v1551_v46  ;;  %v1557_v51 = vpop.xlane.xlu1 %1556  ;;  %1622 = vadd.xlane.f32.xlu0 %v1621_v25  ;;  %v1618_v39 = vsel %vm1515_vm1, %v3910_v47, 0.0 }
 0x256   :  { %3329 = vpow2.f32 %v1598_v29  ;;  %v1577_v21 = vsub.f32 %v3850_v23, %v1557_v51  ;;  %v586_v29 = vrot.slane %v578_v31, %v3647_v17 }
 0x257   :  { %v3913_v33 = vpop.eup %3319  ;;  %v1602_v54 = vmul.f32 1.442695, %v1575_v14 }
 0x258   :  { %v1548_v55 = vpop.xlane.xlu0 %1547  ;;  %v1612_v56 = vsel %vm1515_vm1, %v3913_v33, 0.0  ;;  %v3919_v57 = vpop.eup %3321  ;;  %v1606_v52 = vmul.f32 1.442695, %v1577_v21 }
 0x259   :  { %3331 = vpow2.f32 %v1602_v54  ;;  %v1574_v62 = vsub.f32 %v3846_v13, %v1548_v55  ;;  %v1554_v37 = vpop.xlane.xlu1 %1553  ;;  %1619 = vadd.xlane.f32.xlu0 %v1618_v39  ;;  %1613 = vadd.xlane.f32.xlu1 %v1612_v56  ;;  %v1627_v24 = vsel %vm1515_vm1, %v3919_v57, 0.0  ;;  %v642_v54 = vcombine.low %v586_v29, %v602_v32 }
 0x25a   :  { %v1576_v63 = vsub.f32 %v3856_v36, %v1554_v37  ;;  %3333 = vpow2.f32 %v1596_v53 }
 0x25b   :  { %v3923_v0 = vpop.eup %3323  ;;  %v1600_v3 = vmul.f32 1.442695, %v1574_v62 }
 0x25c   :  { %v1604_v4 = vmul.f32 1.442695, %v1576_v63  ;;  %v1563_v6 = vpop.xlane.xlu0 %1562  ;;  %v1633_v27 = vsel %vm1515_vm1, %v3923_v0, 0.0  ;;  %v3929_v30 = vpop.eup %3325 }
 0x25d   :  { %3335 = vpow2.f32 %v1600_v3  ;;  %v1579_v13 = vsub.f32 %v3852_v40, %v1563_v6  ;;  %v561_v18 = vpop.permute.xlu1 %560  ;;  %1628 = vadd.xlane.f32.xlu1 %v1627_v24  ;;  %1634 = vadd.xlane.f32.xlu0 %v1633_v27  ;;  %v1624_v40 = vsel %vm1515_vm1, %v3929_v30, 0.0  ;;  %v674_v6 = vcombine.low %v618_v60, %v634_v61 }
 0x25e   :  { %v715_v36 = vcombine.high %v3892_v48, %v561_v18  ;;  %3337 = vpow2.f32 %v1604_v4  ;;  %v714_v55 = vcombine.low %v3892_v48, %v561_v18  ;;  %v643_v27 = vcombine.high %v586_v29, %v602_v32 }
 0x25f   :  { %v3933_v34 = vpop.eup %3327  ;;  %v1610_v38 = vmul.f32 1.442695, %v1579_v13  ;;  %v650_v48 = vrot.slane %v642_v54, %v3653_v26 }
 0x260   :  { %v1560_v28 = vpop.xlane.xlu0 %1559  ;;  %v1630_v43 = vsel %vm1515_vm1, %v3933_v34, 0.0  ;;  %v3944_v35 = vpop.eup %3329  ;;  %v729_v51 = vrot.slane %v715_v36, %v3647_v17  ;;  %v722_v13 = vrot.slane %v714_v55, %v3647_v17 }
 0x261   :  { %v1578_v20 = vsub.f32 %v3858_v42, %v1560_v28  ;;  %1625 = vadd.xlane.f32.xlu1 %v1624_v40  ;;  %1631 = vadd.xlane.f32.xlu0 %v1630_v43  ;;  %v567_v23 = vpop.permute.xlu1 %566  ;;  %3339 = vpow2.f32 %v1610_v38  ;;  %v1639_v42 = vsel %vm1515_vm1, %v3944_v35, 0.0  ;;  %v675_v40 = vcombine.high %v618_v60, %v634_v61 }
 0x262   :  { %v682_v43 = vrot.slane %v674_v6, %v3653_v26 }
 0x263   :  { %v3951_v50 = vpop.eup %3331  ;;  %v1608_v41 = vmul.f32 1.442695, %v1578_v20  ;;  %v689_v61 = vrot.slane %v675_v40, %v3653_v26 }
 0x264   :  { %v564_v44 = vpop.permute.xlu0 %563  ;;  %v1645_v45 = vsel %vm1515_vm1, %v3951_v50, 0.0  ;;  %v3959_v58 = vpop.eup %3333 }
 0x265   :  { %3341 = vpow2.f32 %v1608_v41  ;;  %v731_v59 = vcombine.high %v3890_v22, %v564_v44  ;;  %1640 = vadd.xlane.f32.xlu1 %v1639_v42  ;;  %1646 = vadd.xlane.f32.xlu0 %v1645_v45  ;;  %v730_v46 = vcombine.low %v3890_v22, %v564_v44  ;;  %v573_v25 = vpop.permute.xlu1 %572  ;;  %v1636_v56 = vsel %vm1515_vm1, %v3959_v58, 0.0 }
 0x266   :  { %3343 = vpow2.f32 %v1606_v52  ;;  %v746_v3 = vcombine.low %v567_v23, %v573_v25  ;;  %v747_v4 = vcombine.high %v567_v23, %v573_v25  ;;  %v657_v41 = vrot.slane %v643_v27, %v3653_v26 }
 0x267   :  { %v3965_v14 = vpop.eup %3335  ;;  %v745_v53 = vrot.slane %v731_v59, %v3647_v17  ;;  %v738_v24 = vrot.slane %v730_v46, %v3647_v17 }
 0x268   :  { %v570_v39 = vpop.permute.xlu0 %569  ;;  %v1642_v62 = vsel %vm1515_vm1, %v3965_v14, 0.0  ;;  %v3974_v37 = vpop.eup %3337  ;;  %v754_v38 = vrot.slane %v746_v3, %v3647_v17  ;;  %v761_v19 = vrot.slane %v747_v4, %v3647_v17  ;;  %v707_v4 = vcombine.high %v650_v48, %v682_v43 }
 0x269   :  { %v794_v22 = vcombine.low %v729_v51, %v745_v53  ;;  %v795_v63 = vcombine.high %v729_v51, %v745_v53  ;;  %1637 = vadd.xlane.f32.xlu1 %v1636_v56  ;;  %1643 = vadd.xlane.f32.xlu0 %v1642_v62  ;;  %v1648_v36 = vsel %vm1515_vm1, %v3974_v37, 0.0  ;;  %v778_v20 = vcombine.low %v722_v13, %v738_v24 }
 0x26a   :  { %v779_v23 = vcombine.high %v722_v13, %v738_v24  ;;  %v706_v51 = vcombine.low %v650_v48, %v682_v43  ;;  %v708_v40 = vcombine.low %v657_v41, %v689_v61 }
 0x26b   :  { %v3981_v21 = vpop.eup %3339  ;;  %v786_v46 = vrot.slane %v778_v20, %v3653_v26  ;;  %v802_v56 = vrot.slane %v794_v22, %v3653_v26  ;;  %v809_v62 = vrot.slane %v795_v63, %v3653_v26  ;;  %v709_v20 = vcombine.high %v657_v41, %v689_v61 }
 0x26c   :  { %v576_v18 = vpop.permute.xlu0 %575  ;;  %v1657_v32 = vsel %vm1515_vm1, %v3981_v21, 0.0  ;;  %v793_v25 = vrot.slane %v779_v23, %v3653_v26 }
 0x26d   :  { %v762_v31 = vcombine.low %v570_v39, %v576_v18  ;;  %v763_v28 = vcombine.high %v570_v39, %v576_v18  ;;  %1649 = vadd.xlane.f32.xlu1 %v1648_v36 }
 0x26f   :  { %v3986_v49 = vpop.eup %3341  ;;  %v770_v2 = vrot.slane %v762_v31, %v3647_v17  ;;  %v777_v52 = vrot.slane %v763_v28, %v3647_v17 }
 0x270   :  { %v1654_v29 = vsel %vm1515_vm1, %v3986_v49, 0.0  ;;  %v3995_v44 = vpop.eup %3343 }
 0x271   :  { %v810_v42 = vcombine.low %v754_v38, %v770_v2  ;;  %v811_v45 = vcombine.high %v754_v38, %v770_v2  ;;  %v826_v59 = vcombine.low %v761_v19, %v777_v52  ;;  %v827_v60 = vcombine.high %v761_v19, %v777_v52  ;;  %1658 = vadd.xlane.f32.xlu1 %v1657_v32 }
 0x272   :  { %1655 = vadd.xlane.f32.xlu0 %v1654_v29  ;;  %v1651_v3 = vsel %vm1515_vm1, %v3995_v44, 0.0 }
 0x273   :  { %v818_v53 = vrot.slane %v810_v42, %v3653_v26  ;;  %v825_v54 = vrot.slane %v811_v45, %v3653_v26  ;;  %v834_v55 = vrot.slane %v826_v59, %v3653_v26  ;;  %v841_v39 = vrot.slane %v827_v60, %v3653_v26 }
 0x275   :  { %v842_v6 = vcombine.low %v786_v46, %v818_v53  ;;  %v843_v24 = vcombine.high %v786_v46, %v818_v53  ;;  %v844_v27 = vcombine.low %v793_v25, %v825_v54  ;;  %v845_v13 = vcombine.high %v793_v25, %v825_v54 }
 0x276   :  { %1652 = vadd.xlane.f32.xlu0 %v1651_v3  ;;  %v846_v18 = vcombine.low %v802_v56, %v834_v55  ;;  %v847_v36 = vcombine.high %v802_v56, %v834_v55  ;;  %v848_v38 = vcombine.low %v809_v62, %v841_v39  ;;  %v849_v19 = vcombine.high %v809_v62, %v841_v39 }
 0x277   :  { %v3259_v31 = vpack.c.bf16 %v842_v6, %v706_v51  ;;  %v3263_v28 = vpack.c.bf16 %v843_v24, %v707_v4  ;;  %v3267_v23 = vpack.c.bf16 %v844_v27, %v708_v40 }
 0x278   :  { %v4011_v22 = vpack.c.bf16 %v846_v18, %v710_v12  ;;  %v4016_v63 = vpack.c.bf16 %v847_v36, %v711_v16  ;;  %v4021_v48 = vpack.c.bf16 %v848_v38, %v712_v5  ;;  %v4026_v43 = vpack.c.bf16 %v849_v19, %v713_v8 }
 0x279   :  { %3260 = vmatprep.subr.bf16.mxu0 %v3259_v31  ;;  %3264 = vmatprep.subr.bf16.mxu1 %v3263_v28  ;;  %v3271_v12 = vpack.c.bf16 %v845_v13, %v709_v20 }
 0x27a   :  { %3262 = vmatpush3.bf16.msra.mxu0 %v3259_v31  ;;  %3266 = vmatpush3.bf16.msra.mxu1 %v3263_v28 }
 0x27b   :  { %3268 = vmatprep.subr.bf16.mxu0 %v3267_v23  ;;  %3272 = vmatprep.subr.bf16.mxu1 %v3271_v12 }
 0x2de   :  { %v1617_v7 = vpop.xlane.xlu1 %1616 }
 0x2df   :  { %3345 = vrcp.f32 %v1617_v7 }
 0x2e2   :  { %v1623_v10 = vpop.xlane.xlu0 %1622 }
 0x2e3   :  { %3347 = vrcp.f32 %v1623_v10 }
 0x2e6   :  { %v1614_v16 = vpop.xlane.xlu1 %1613  ;;  %v1620_v5 = vpop.xlane.xlu0 %1619 }
 0x2e7   :  { %3349 = vrcp.f32 %v1614_v16 }
 0x2e8   :  { %3351 = vrcp.f32 %v1620_v5 }
 0x2e9   :  { %v3346_v52 = vpop.eup %3345 }
 0x2ea   :  { %v1629_v2 = vpop.xlane.xlu1 %1628  ;;  %v1635_v9 = vpop.xlane.xlu0 %1634  ;;  %v4032_v60 = vmul.f32 %v3346_v52, %v3899_v15 }
 0x2eb   :  { %3353 = vrcp.f32 %v1629_v2 }
 0x2ec   :  { %3355 = vrcp.f32 %v1635_v9 }
 0x2ed   :  { %v3348_v41 = vpop.eup %3347 }
 0x2ee   :  { %v1626_v11 = vpop.xlane.xlu1 %1625  ;;  %v1632_v8 = vpop.xlane.xlu0 %1631  ;;  %v4038_v46 = vmul.f32 %v3348_v41, %v3905_v1 }
 0x2ef   :  { %3357 = vrcp.f32 %v1626_v11 }
 0x2f0   :  { %3359 = vrcp.f32 %v1632_v8 }
 0x2f1   :  { %v3350_v32 = vpop.eup %3349 }
 0x2f2   :  { %v3352_v29 = vpop.eup %3351  ;;  %v1641_v42 = vpop.xlane.xlu1 %1640  ;;  %v4029_v59 = vmul.f32 %v3350_v32, %v3913_v33 }
 0x2f3   :  { %v1647_v45 = vpop.xlane.xlu0 %1646  ;;  %v4035_v61 = vmul.f32 %v3352_v29, %v3910_v47  ;;  %3361 = vrcp.f32 %v1641_v42 }
 0x2f4   :  { %3207 = vmatprep.mubr.msk.f32.mxu0 %vm1515_vm1, %v4029_v59  ;;  %3363 = vrcp.f32 %v1647_v45 }
 0x2f5   :  { %v3354_v25 = vpop.eup %3353  ;;  %3214 = vmatprep.mubr.msk.f32.mxu1 %vm1515_vm1, %v4035_v61  ;;  %3208 = vmatmul.mubr.msk.f32.vlgmr.msra.gmra.mrb[8].mxu0 %vm1515_vm1, %v4032_v60 }
 0x2f6   :  { %v3356_v33 = vpop.eup %3355  ;;  %v4047_v15 = vmul.f32 %v3354_v25, %v3919_v57  ;;  %3215 = vmatmul.mubr.msk.f32.vlgmr.msra.gmra.mrb[8].mxu1 %vm1515_vm1, %v4038_v46  ;;  %3270 = vmatpush3.bf16.msra.mxu0 %v3267_v23  ;;  %v1638_v1 = vpop.xlane.xlu1 %1637 }
 0x2f7   :  { %v4052_v47 = vmul.f32 %v3356_v33, %v3923_v0  ;;  %3274 = vmatpush3.bf16.msra.mxu1 %v3271_v12  ;;  %3365 = vrcp.f32 %v1638_v1  ;;  %3276 = vmatprep.subr.bf16.mxu0 %v4011_v22  ;;  %v1644_v51 = vpop.xlane.xlu0 %1643 }
 0x2f8   :  { %3280 = vmatprep.subr.bf16.mxu1 %v4016_v63  ;;  %3367 = vrcp.f32 %v1644_v51  ;;  %v2838_v57 = vcombine.high %v4032_v60, %v4047_v15  ;;  %v2837_v10 = vcombine.low %v4032_v60, %v4047_v15 }
 0x2f9   :  { %v3358_v53 = vpop.eup %3357  ;;  %v2854_v54 = vcombine.high %v4038_v46, %v4052_v47 }
 0x2fa   :  { %v3360_v55 = vpop.eup %3359  ;;  %v1650_v39 = vpop.xlane.xlu1 %1649  ;;  %v1680_v0 = vmul.f32 %v3358_v53, %v3929_v30  ;;  %v4067_v62 = vrot.slane %v2838_v57, %v3647_v17  ;;  %v2845_v8 = vrot.slane %v2837_v10, %v3647_v17 }
 0x2fb   :  { %3369 = vrcp.f32 %v1650_v39  ;;  %v1682_v56 = vmul.f32 %v3360_v55, %v3933_v34  ;;  %v4070_v3 = vrot.slane %v2854_v54, %v3647_v17 }
 0x2fc   :  { %3221 = vmatprep.mubr.msk.f32.mxu0 %vm1515_vm1, %v1680_v0  ;;  %v2702_v4 = vcombine.high %v4029_v59, %v1680_v0 }
 0x2fd   :  { %3228 = vmatprep.mubr.msk.f32.mxu1 %vm1515_vm1, %v1682_v56  ;;  %3222 = vmatmul.mubr.msk.f32.vlgmr.msra.gmra.mrb[10].mxu0 %vm1515_vm1, %v4047_v15  ;;  %v3362_v34 = vpop.eup %3361  ;;  %v2718_v18 = vcombine.high %v4035_v61, %v1682_v56  ;;  %v2918_v36 = vcombine.high %v4067_v62, %v4070_v3  ;;  %v2717_v23 = vcombine.low %v4035_v61, %v1682_v56 }
 0x2fe   :  { %3229 = vmatmul.mubr.msk.f32.vlgmr.msra.gmra.mrb[10].mxu1 %vm1515_vm1, %v4052_v47  ;;  %3278 = vmatpush3.bf16.msra.mxu0 %v4011_v22  ;;  %v1659_v30 = vpop.xlane.xlu1 %1658  ;;  %v3364_v24 = vpop.eup %3363  ;;  %v4080_v13 = vrot.slane %v2702_v4, %v3647_v17  ;;  %v1685_v31 = vmul.f32 %v3362_v34, %v3944_v35 }
 0x2ff   :  { %3282 = vmatpush3.bf16.msra.mxu1 %v4016_v63  ;;  %3371 = vrcp.f32 %v1659_v30  ;;  %3284 = vmatprep.subr.bf16.mxu0 %v4021_v48  ;;  %v1656_v6 = vpop.xlane.xlu0 %1655  ;;  %v4089_v20 = vrot.slane %v2718_v18, %v3647_v17  ;;  %v1687_v22 = vmul.f32 %v3364_v24, %v3951_v50  ;;  %v4115_v2 = vrot.slane %v2717_v23, %v3647_v17 }
 0x300   :  { %3288 = vmatprep.subr.bf16.mxu1 %v4026_v43  ;;  %3373 = vrcp.f32 %v1656_v6  ;;  %v2917_v30 = vcombine.low %v4067_v62, %v4070_v3 }
 0x301   :  { %v3366_v27 = vpop.eup %3365 }
 0x302   :  { %v3368_v38 = vpop.eup %3367  ;;  %v1684_v19 = vmul.f32 %v3366_v27, %v3959_v58  ;;  %v2782_v58 = vcombine.high %v4080_v13, %v4089_v20 }
 0x303   :  { %v1653_v28 = vpop.xlane.xlu0 %1652  ;;  %v1686_v40 = vmul.f32 %v3368_v38, %v3965_v14  ;;  %v2701_v14 = vcombine.low %v4029_v59, %v1680_v0 }
 0x304   :  { %3375 = vrcp.f32 %v1653_v28  ;;  %3235 = vmatprep.mubr.msk.f32.mxu0 %vm1515_vm1, %v1684_v19  ;;  %v4145_v34 = vrot.slane %v2782_v58, %v3653_v26 }
 0x305   :  { %v3370_v63 = vpop.eup %3369  ;;  %3242 = vmatprep.mubr.msk.f32.mxu1 %vm1515_vm1, %v1686_v40  ;;  %3236 = vmatmul.mubr.msk.f32.vlgmr.msra.gmra.mrb[12].mxu0 %vm1515_vm1, %v1685_v31  ;;  %v4112_v5 = vrot.slane %v2701_v14, %v3647_v17 }
 0x306   :  { %3243 = vmatmul.mubr.msk.f32.vlgmr.msra.gmra.mrb[12].mxu1 %vm1515_vm1, %v1687_v22  ;;  %3286 = vmatpush3.bf16.msra.mxu0 %v4021_v48  ;;  %v1688_v35 = vmul.f32 %v3370_v63, %v3974_v37  ;;  %v2853_v48 = vcombine.low %v4038_v46, %v4052_v47  ;;  %v4167_v63 = vrot.slane %v2918_v36, %v3653_v26 }
 0x307   :  { %3290 = vmatpush3.bf16.msra.mxu1 %v4026_v43  ;;  %v2765_v46 = vcombine.low %v4112_v5, %v4115_v2 }
 0x308   :  { %3249 = vmatprep.mubr.msk.f32.mxu0 %vm1515_vm1, %v1688_v35  ;;  %v2733_v16 = vcombine.low %v1684_v19, %v1688_v35  ;;  %v2734_v43 = vcombine.high %v1684_v19, %v1688_v35  ;;  %v2861_v52 = vrot.slane %v2853_v48, %v3647_v17 }
 0x309   :  { %v3372_v50 = vpop.eup %3371  ;;  %v4139_v56 = vrot.slane %v2765_v46, %v3653_v26 }
 0x30a   :  { %v3374_v12 = vpop.eup %3373  ;;  %v1691_v7 = vmul.f32 %v3372_v50, %v3981_v21  ;;  %v2748_v59 = vrot.slane %v2734_v43, %v3647_v17  ;;  %v2902_v15 = vcombine.high %v2845_v8, %v2861_v52  ;;  %v2901_v1 = vcombine.low %v2845_v8, %v2861_v52 }
 0x30b   :  { %v1690_v37 = vmul.f32 %v3374_v12, %v3986_v49  ;;  %v2741_v49 = vrot.slane %v2733_v16, %v3647_v17  ;;  %v2925_v50 = vrot.slane %v2917_v30, %v3653_v26  ;;  %v2766_v12 = vcombine.high %v4112_v5, %v4115_v2 }
 0x30c   :  { %v2885_v41 = vcombine.low %v1687_v22, %v1691_v7  ;;  %v2886_v29 = vcombine.high %v1687_v22, %v1691_v7  ;;  %v2916_v4 = vrot.slane %v2902_v15, %v3653_v26  ;;  %v4149_v24 = vrot.slane %v2901_v1, %v3653_v26 }
 0x30d   :  { %3256 = vmatprep.mubr.msk.f32.mxu1 %vm1515_vm1, %v1690_v37  ;;  %v2749_v9 = vcombine.low %v1686_v40, %v1690_v37  ;;  %v2750_v21 = vcombine.high %v1686_v40, %v1690_v37  ;;  %v2780_v37 = vrot.slane %v2766_v12, %v3653_v26  ;;  %v2781_v43 = vcombine.low %v4080_v13, %v4089_v20 }
 0x30e   :  { %v3376_v11 = vpop.eup %3375  ;;  %3257 = vmatmul.mubr.msk.f32.vlgmr.msra.gmra.mrb[14].mxu1 %vm1515_vm1, %v1691_v7  ;;  %v2893_v33 = vrot.slane %v2885_v41, %v3647_v17  ;;  %v2900_v53 = vrot.slane %v2886_v29, %v3647_v17 }
 0x30f   :  { %v1689_v32 = vmul.f32 %v3376_v11, %v3995_v44  ;;  %v2757_v42 = vrot.slane %v2749_v9, %v3647_v17  ;;  %v2764_v45 = vrot.slane %v2750_v21, %v3647_v17  ;;  %v2789_v2 = vrot.slane %v2781_v43, %v3653_v26 }
 0x311   :  { %3250 = vmatmul.mubr.msk.f32.vlgmr.msra.gmra.mrb[14].mxu0 %vm1515_vm1, %v1689_v32  ;;  %v2869_v60 = vcombine.low %v1685_v31, %v1689_v32  ;;  %v2870_v61 = vcombine.high %v1685_v31, %v1689_v32  ;;  %v2797_v25 = vcombine.low %v2741_v49, %v2757_v42  ;;  %v2814_v44 = vcombine.high %v2748_v59, %v2764_v45 }
 0x312   :  { %v2798_v23 = vcombine.high %v2741_v49, %v2757_v42  ;;  %v2813_v16 = vcombine.low %v2748_v59, %v2764_v45 }
 0x313   :  { %v2877_v47 = vrot.slane %v2869_v60, %v3647_v17  ;;  %v2884_v51 = vrot.slane %v2870_v61, %v3647_v17  ;;  %v4133_v57 = vrot.slane %v2797_v25, %v3653_v26  ;;  %v4136_v54 = vrot.slane %v2814_v44, %v3653_v26 }
 0x314   :  { %v2812_v48 = vrot.slane %v2798_v23, %v3653_v26  ;;  %v2821_v5 = vrot.slane %v2813_v16, %v3653_v26 }
 0x315   :  { %v2934_v55 = vcombine.high %v2877_v47, %v2893_v33  ;;  %v2933_v39 = vcombine.low %v2877_v47, %v2893_v33  ;;  %v2949_v0 = vcombine.low %v2884_v51, %v2900_v53  ;;  %v2829_v18 = vcombine.low %v4139_v56, %v4133_v57 }
 0x316   :  { %v2835_v38 = vcombine.low %v4145_v34, %v4136_v54  ;;  %v2950_v19 = vcombine.high %v2884_v51, %v2900_v53  ;;  %v2836_v35 = vcombine.high %v4145_v34, %v4136_v54  ;;  %v2830_v7 = vcombine.high %v4139_v56, %v4133_v57 }
 0x317   :  { %v2948_v6 = vrot.slane %v2934_v55, %v3653_v26  ;;  %v4152_v27 = vrot.slane %v2933_v39, %v3653_v26  ;;  %v2957_v40 = vrot.slane %v2949_v0, %v3653_v26  ;;  %v2832_v9 = vcombine.high %v2780_v37, %v2812_v48 }
 0x318   :  { %v4170_v58 = vrot.slane %v2950_v19, %v3653_v26  ;;  %v2831_v21 = vcombine.low %v2780_v37, %v2812_v48  ;;  %v2834_v11 = vcombine.high %v2789_v2, %v2821_v5  ;;  %v2833_v8 = vcombine.low %v2789_v2, %v2821_v5 }
 0x319   :  { %v2967_v31 = vcombine.low %v2916_v4, %v2948_v6  ;;  %v2966_v28 = vcombine.high %v4149_v24, %v4152_v27  ;;  %v2965_v22 = vcombine.low %v4149_v24, %v4152_v27  ;;  %v2969_v3 = vcombine.low %v2925_v50, %v2957_v40 }
 0x31a   :  { %v2971_v14 = vcombine.low %v4167_v63, %v4170_v58  ;;  %v2972_v62 = vcombine.high %v4167_v63, %v4170_v58  ;;  %v2968_v36 = vcombine.high %v2916_v4, %v2948_v6  ;;  %v2970_v10 = vcombine.high %v2925_v50, %v2957_v40 }
 0x31b   :  { %3006 = vrot.lane.b32.xlu0 %v2967_v31, %s3508_s6  ;;  %3002 = vrot.lane.b32.xlu1 %v2966_v28, %s3510_s8 }
 0x31f   :  { %3014 = vrot.lane.b32.xlu0 %v2969_v3, %s3504_s28  ;;  %3010 = vrot.lane.b32.xlu1 %v2968_v36, %s3506_s30 }
 0x323   :  { %2974 = vrot.lane.b32.xlu0 %v2830_v7, %s3510_s8  ;;  %3018 = vrot.lane.b32.xlu1 %v2970_v10, %s3502_s2 }
 0x327   :  { %2982 = vrot.lane.b32.xlu0 %v2832_v9, %s3506_s30  ;;  %2978 = vrot.lane.b32.xlu1 %v2831_v21, %s3508_s6 }
 0x32b   :  { %2990 = vrot.lane.b32.xlu0 %v2834_v11, %s3502_s2  ;;  %2986 = vrot.lane.b32.xlu1 %v2833_v8, %s3504_s28 }
 0x3c8   :  { %v3209_v52 = vpop.f32.mrb[8].mxu0 }
 0x3c9   :  { %v3216_v41 = vpop.f32.mrb[8].mxu1  ;;  %v1764_v49 = vpop.f32.mrb[9].mxu0 }
 0x3ca   :  { %v1845_v13 = vpop.f32.mrb[9].mxu1 }
 0x3d0   :  { %v3223_v20 = vpop.f32.mrb[10].mxu0 }
 0x3d1   :  { %v2476_v32 = vcombine.low %v3209_v52, %v3223_v20  ;;  %v2477_v29 = vcombine.high %v3209_v52, %v3223_v20  ;;  %v3230_v42 = vpop.f32.mrb[10].mxu1  ;;  %v1926_v45 = vpop.f32.mrb[11].mxu0 }
 0x3d2   :  { %v2492_v59 = vcombine.low %v3216_v41, %v3230_v42  ;;  %v2493_v60 = vcombine.high %v3216_v41, %v3230_v42  ;;  %v2340_v61 = vcombine.low %v1764_v49, %v1926_v45  ;;  %v2341_v46 = vcombine.high %v1764_v49, %v1926_v45  ;;  %v2007_v25 = vpop.f32.mrb[11].mxu1 }
 0x3d3   :  { %v2484_v33 = vrot.slane %v2476_v32, %v3647_v17  ;;  %v2491_v15 = vrot.slane %v2477_v29, %v3647_v17  ;;  %v2356_v1 = vcombine.low %v1845_v13, %v2007_v25  ;;  %v2357_v44 = vcombine.high %v1845_v13, %v2007_v25 }
 0x3d4   :  { %v2500_v47 = vrot.slane %v2492_v59, %v3647_v17  ;;  %v2507_v51 = vrot.slane %v2493_v60, %v3647_v17  ;;  %v2348_v53 = vrot.slane %v2340_v61, %v3647_v17  ;;  %v2355_v55 = vrot.slane %v2341_v46, %v3647_v17 }
 0x3d5   :  { %v2364_v39 = vrot.slane %v2356_v1, %v3647_v17  ;;  %v2371_v0 = vrot.slane %v2357_v44, %v3647_v17 }
 0x3d6   :  { %v2540_v4 = vcombine.low %v2484_v33, %v2500_v47  ;;  %v2541_v30 = vcombine.high %v2484_v33, %v2500_v47  ;;  %v2556_v6 = vcombine.low %v2491_v15, %v2507_v51  ;;  %v2557_v19 = vcombine.high %v2491_v15, %v2507_v51 }
 0x3d7   :  { %v2404_v31 = vcombine.low %v2348_v53, %v2364_v39  ;;  %v2405_v28 = vcombine.high %v2348_v53, %v2364_v39  ;;  %v2420_v40 = vcombine.low %v2355_v55, %v2371_v0  ;;  %v2421_v50 = vcombine.high %v2355_v55, %v2371_v0 }
 0x3d8   :  { %v3237_v3 = vpop.f32.mrb[12].mxu0  ;;  %v2548_v21 = vrot.slane %v2540_v4, %v3653_v26  ;;  %v2555_v5 = vrot.slane %v2541_v30, %v3653_v26  ;;  %v2564_v2 = vrot.slane %v2556_v6, %v3653_v26  ;;  %v4211_v11 = vrot.slane %v2557_v19, %v3653_v26 }
 0x3d9   :  { %v3244_v36 = vpop.f32.mrb[12].mxu1  ;;  %v2088_v23 = vpop.f32.mrb[13].mxu0  ;;  %v2419_v49 = vrot.slane %v2405_v28, %v3653_v26  ;;  %v4215_v13 = vrot.slane %v2404_v31, %v3653_v26  ;;  %v2428_v29 = vrot.slane %v2420_v40, %v3653_v26  ;;  %v2435_v42 = vrot.slane %v2421_v50, %v3653_v26 }
 0x3da   :  { %v2169_v12 = vpop.f32.mrb[13].mxu1 }
 0x3e1   :  { %v3258_v7 = vpop.f32.mrb[14].mxu1 }
 0x3e2   :  { %v2524_v10 = vcombine.low %v3244_v36, %v3258_v7  ;;  %v2525_v48 = vcombine.high %v3244_v36, %v3258_v7  ;;  %v2331_v16 = vpop.f32.mrb[15].mxu1 }
 0x3e3   :  { %v2388_v37 = vcombine.low %v2169_v12, %v2331_v16  ;;  %v2389_v43 = vcombine.high %v2169_v12, %v2331_v16 }
 0x3e4   :  { %v3251_v9 = vpop.f32.mrb[14].mxu0  ;;  %v2532_v45 = vrot.slane %v2524_v10, %v3647_v17  ;;  %v2539_v59 = vrot.slane %v2525_v48, %v3647_v17 }
 0x3e5   :  { %v2508_v8 = vcombine.low %v3237_v3, %v3251_v9  ;;  %v2509_v52 = vcombine.high %v3237_v3, %v3251_v9  ;;  %v2250_v41 = vpop.f32.mrb[15].mxu0  ;;  %v2396_v46 = vrot.slane %v2388_v37, %v3647_v17  ;;  %v2403_v25 = vrot.slane %v2389_v43, %v3647_v17 }
 0x3e6   :  { %v2372_v20 = vcombine.low %v2088_v23, %v2250_v41  ;;  %v2373_v32 = vcombine.high %v2088_v23, %v2250_v41 }
 0x3e7   :  { %v2516_v60 = vrot.slane %v2508_v8, %v3647_v17  ;;  %v2523_v61 = vrot.slane %v2509_v52, %v3647_v17 }
 0x3e8   :  { %v2380_v33 = vrot.slane %v2372_v20, %v3647_v17  ;;  %v2387_v15 = vrot.slane %v2373_v32, %v3647_v17 }
 0x3e9   :  { %v2572_v1 = vcombine.low %v2516_v60, %v2532_v45  ;;  %v2573_v44 = vcombine.high %v2516_v60, %v2532_v45  ;;  %v2588_v47 = vcombine.low %v2523_v61, %v2539_v59  ;;  %v2589_v51 = vcombine.high %v2523_v61, %v2539_v59 }
 0x3ea   :  { %v2436_v53 = vcombine.low %v2380_v33, %v2396_v46  ;;  %v2437_v55 = vcombine.high %v2380_v33, %v2396_v46  ;;  %v2452_v39 = vcombine.low %v2387_v15, %v2403_v25  ;;  %v2453_v0 = vcombine.high %v2387_v15, %v2403_v25 }
 0x3eb   :  { %v2580_v4 = vrot.slane %v2572_v1, %v3653_v26  ;;  %v2587_v30 = vrot.slane %v2573_v44, %v3653_v26  ;;  %v2596_v6 = vrot.slane %v2588_v47, %v3653_v26  ;;  %v2603_v19 = vrot.slane %v2589_v51, %v3653_v26 }
 0x3ec   :  { %v2451_v31 = vrot.slane %v2437_v55, %v3653_v26  ;;  %v2444_v17 = vrot.slane %v2436_v53, %v3653_v26  ;;  %v2460_v28 = vrot.slane %v2452_v39, %v3653_v26  ;;  %v2467_v40 = vrot.slane %v2453_v0, %v3653_v26 }
 0x3ed   :  { %v2605_v50 = vcombine.high %v2548_v21, %v2580_v4  ;;  %v2604_v3 = vcombine.low %v2548_v21, %v2580_v4  ;;  %v2607_v36 = vcombine.high %v2555_v5, %v2587_v30  ;;  %v2606_v23 = vcombine.low %v2555_v5, %v2587_v30 }
 0x3ee   :  { %v2609_v12 = vcombine.high %v2564_v2, %v2596_v6  ;;  %v2608_v7 = vcombine.low %v2564_v2, %v2596_v6  ;;  %v2470_v10 = vcombine.low %v2419_v49, %v2451_v31  ;;  %v2469_v48 = vcombine.high %v4215_v13, %v2444_v17  ;;  %v3003_v2 = vpop.permute.xlu1 %3002 }
 0x3ef   :  { %2645 = vrot.lane.b32.xlu1 %v2605_v50, %s3505_s29  ;;  %2641 = vrot.lane.b32.xlu0 %v2604_v3, %s3504_s28  ;;  %v2471_v16 = vcombine.high %v2419_v49, %v2451_v31  ;;  %v2472_v37 = vcombine.low %v2428_v29, %v2460_v28  ;;  %v2473_v43 = vcombine.high %v2428_v29, %v2460_v28 }
 0x3f0   :  { %v2474_v9 = vcombine.low %v2435_v42, %v2467_v40  ;;  %v2610_v8 = vcombine.low %v4211_v11, %v2603_v19  ;;  %v2475_v26 = vcombine.high %v2435_v42, %v2467_v40  ;;  %v2611_v21 = vcombine.high %v4211_v11, %v2603_v19 }
 0x3f1   :  { %v2468_v5 = vcombine.low %v4215_v13, %v2444_v17  ;;  %v3036_v55 = vsel %vm1515_vm1, %v2965_v22, %v3003_v2 }
 0x3f2   :  { %v3011_v52 = vpop.permute.xlu1 %3010 }
 0x3f3   :  { %2653 = vrot.lane.b32.xlu1 %v2607_v36, %s3503_s27  ;;  %2649 = vrot.lane.b32.xlu0 %v2606_v23, %s3502_s2 }
 0x3f6   :  { %v4270_v49 = vpop.permute.xlu1 %3018 }
 0x3f7   :  { %2661 = vrot.lane.b32.xlu1 %v2609_v12, %s3498_s23  ;;  %2657 = vrot.lane.b32.xlu0 %v2608_v7, %s3500_s25 }
 0x3fa   :  { %v2979_v13 = vpop.permute.xlu1 %2978 }
 0x3fb   :  { %2617 = vrot.lane.b32.xlu1 %v2470_v10, %s3510_s8  ;;  %2613 = vrot.lane.b32.xlu0 %v2469_v48, %s3512_s10 }
 0x3fe   :  { %v2987_v32 = vpop.permute.xlu1 %2986 }
 0x3ff   :  { %2621 = vrot.lane.b32.xlu1 %v2471_v16, %s3511_s9  ;;  %2625 = vrot.lane.b32.xlu0 %v2472_v37, %s3508_s6 }
 0x403   :  { %2629 = vrot.lane.b32.xlu1 %v2473_v43, %s3509_s7  ;;  %2633 = vrot.lane.b32.xlu0 %v2474_v9, %s3506_s30 }
 0x407   :  { %2994 = vrot.lane.b32.xlu1 %v2835_v38, %s3500_s25  ;;  %2665 = vrot.lane.b32.xlu0 %v2610_v8, %s3501_s26  ;;  %v3007_v38 = vpop.permute.xlu0 %3006 }
 0x408   :  { %v3037_v30 = vsel %vm2676_vm4, %v3036_v55, %v3007_v38 }
 0x409   :  { %v3038_v24 = vsel %vm2680_vm5, %v3037_v30, %v3011_v52 }
 0x40b   :  { %2637 = vrot.lane.b32.xlu1 %v2475_v26, %s3507_s5  ;;  %3022 = vrot.lane.b32.xlu0 %v2971_v14, %s3500_s25  ;;  %v3015_v11 = vpop.permute.xlu0 %3014 }
 0x40c   :  { %v3039_v3 = vsel %vm2684_vm7, %v3038_v24, %v3015_v11 }
 0x40d   :  { %v3040_v23 = vsel %vm2688_vm9, %v3039_v3, %v4270_v49 }
 0x40f   :  { %2669 = vrot.lane.b32.xlu1 %v2611_v21, %s3499_s24  ;;  %2998 = vrot.lane.b32.xlu0 %v2836_v35, %s3501_s26  ;;  %v2975_v41 = vpop.permute.xlu0 %2974 }
 0x410   :  { %v3029_v15 = vsel %vm1515_vm1, %v2829_v18, %v2975_v41 }
 0x411   :  { %v3030_v1 = vsel %vm2676_vm4, %v3029_v15, %v2979_v13 }
 0x413   :  { %3026 = vrot.lane.b32.xlu1 %v2972_v62, %s3501_s26  ;;  %v2983_v14 = vpop.permute.xlu0 %2982 }
 0x414   :  { %v3031_v39 = vsel %vm2680_vm5, %v3030_v1, %v2983_v14 }
 0x415   :  { %v3032_v57 = vsel %vm2684_vm7, %v3031_v39, %v2987_v32 }
 0x417   :  { %v2991_v20 = vpop.permute.xlu0 %2990 }
 0x418   :  { %v3033_v27 = vsel %vm2688_vm9, %v3032_v57, %v2991_v20 }
 0x461   :  { %v2646_v29 = vpop.permute.xlu1 %2645  ;;  %v2642_v42 = vpop.permute.xlu0 %2641 }
 0x465   :  { %v2654_v54 = vpop.permute.xlu1 %2653  ;;  %v2650_v34 = vpop.permute.xlu0 %2649 }
 0x469   :  { %v2662_v35 = vpop.permute.xlu1 %2661  ;;  %v2658_v45 = vpop.permute.xlu0 %2657 }
 0x46d   :  { %v2618_v59 = vpop.permute.xlu1 %2617  ;;  %v2614_v63 = vpop.permute.xlu0 %2613 }
 0x46e   :  { %v2672_v60 = vsel %vm866_vm0, %v2468_v5, %v2614_v63 }
 0x46f   :  { %v2673_v61 = vsel %vm1515_vm1, %v2672_v60, %v2618_v59 }
 0x471   :  { %v2622_v58 = vpop.permute.xlu1 %2621  ;;  %v2626_v62 = vpop.permute.xlu0 %2625 }
 0x472   :  { %v2675_v33 = vsel %vm2674_vm2, %v2673_v61, %v2622_v58 }
 0x473   :  { %v2677_v44 = vsel %vm2676_vm4, %v2675_v33, %v2626_v62 }
 0x475   :  { %v2630_v46 = vpop.permute.xlu1 %2629  ;;  %v2634_v25 = vpop.permute.xlu0 %2633 }
 0x476   :  { %v2679_v53 = vsel %vm2678_vm3, %v2677_v44, %v2630_v46 }
 0x477   :  { %v2681_v56 = vsel %vm2680_vm5, %v2679_v53, %v2634_v25 }
 0x479   :  { %v2995_v47 = vpop.permute.xlu1 %2994  ;;  %v2666_v51 = vpop.permute.xlu0 %2665 }
 0x47a   :  { %v3034_v19 = vsel %vm2692_vm10, %v3033_v27, %v2995_v47 }
 0x47d   :  { %v2638_v18 = vpop.permute.xlu1 %2637  ;;  %v3023_v0 = vpop.permute.xlu0 %3022 }
 0x47e   :  { %v2683_v4 = vsel %vm2682_vm6, %v2681_v56, %v2638_v18  ;;  %v3041_v7 = vsel %vm2692_vm10, %v3040_v23, %v3023_v0 }
 0x47f   :  { %v2685_v6 = vsel %vm2684_vm7, %v2683_v4, %v2642_v42 }
 0x480   :  { %v2687_v22 = vsel %vm2686_vm8, %v2685_v6, %v2646_v29 }
 0x481   :  { %v2689_v31 = vsel %vm2688_vm9, %v2687_v22, %v2650_v34  ;;  %v2670_v17 = vpop.permute.xlu1 %2669  ;;  %v2999_v28 = vpop.permute.xlu0 %2998 }
 0x482   :  { %v2691_v40 = vsel %vm2690_vm11, %v2689_v31, %v2654_v54  ;;  %v3035_v50 = vsel %vm2696_vm12, %v3034_v19, %v2999_v28 }
 0x483   :  { %v2693_v36 = vsel %vm2692_vm10, %v2691_v40, %v2658_v45  ;;  %3043 = vst [vmem:[#allocation9] sm:$0xff] %v3035_v50 }
 0x484   :  { %v2695_v12 = vsel %vm2694_vm13, %v2693_v36, %v2662_v35 }
 0x485   :  { %v2697_v10 = vsel %vm2696_vm12, %v2695_v12, %v2666_v51  ;;  %v3027_v48 = vpop.permute.xlu1 %3026 }
 0x486   :  { %v2699_v16 = vsel %vm2698_vm14, %v2697_v10, %v2670_v17  ;;  %v3042_v37 = vsel %vm2696_vm12, %v3041_v7, %v3027_v48 }
 0x487   :  { %2700 = vst [vmem:[#allocation8] sm:$0xff] %v2699_v16  ;;  %3044 = vst [vmem:[#allocation9 + $0x8] sm:$0xff] %v3042_v37 }
 0x488   :  { %3454 = shalt.err (!%p3451_p0)
}
 0x489   :  { %s3455_s17 = scalar_lea.hbm %s4328_s3, 128 }
 0x48a   :  { %p3456_p1 = scmp.ne.s32.totalorder %s4328_s3, %s3455_s17  ;;  %p3459_p2 = scmp.lt.u32.totalorder %s3455_s17, %s4328_s3 }
 0x48c   :  { %p3461_p3 = pnand %p3459_p2, %p3456_p1 }
 0x48e   :  { %3464 = shalt.err (!%p3461_p3)
}
 0x48f   :  { %3054 = dma.vmem_to_hbm [thread:$0]  %s3052_s11, 128, %s4328_s3, [#allocation4]  }
 0x490   :  { %s3465_s23 = scalar_lea.vmem %s3062_s13, 256  ;;  %p3470_p5 = scmp.lt.s32.totalorder %s3062_s13, %s3062_s13 }
 0x491   :  { %p3466_p4 = scmp.ne.s32.totalorder %s3062_s13, %s3465_s23  ;;  %p3471_p6 = scmp.lt.s32.totalorder %s3465_s23, %s3465_s23 }
 0x493   :  { %p3472_p7 = por %p3471_p6, %p3470_p5 }
 0x495   :  { %p3473_p8 = pnand %p3472_p7, %p3466_p4 }
 0x497   :  { %3476 = shalt.err (!%p3473_p8)
}
 0x498   :  { %s3477_s26 = scalar_lea.hbm %s4329_s4, 256 }
 0x499   :  { %p3478_p9 = scmp.ne.s32.totalorder %s4329_s4, %s3477_s26  ;;  %p3481_p10 = scmp.lt.u32.totalorder %s3477_s26, %s4329_s4 }
 0x49b   :  { %p3483_p11 = pnand %p3481_p10, %p3478_p9 }
 0x49d   :  { %3486 = shalt.err (!%p3483_p11)
}
 0x49e   :  { %3064 = dma.vmem_to_hbm [thread:$0]  %s3062_s13, 256, %s4329_s4, [#allocation10]  }
 0x49f   :  { %3491 = dma.done.wait [#allocation4], 128  }
 0x4a0   :  { %3492 = vsyncadd [#allocation4], 4294967168 }
 0x4a1   :  { %3493 = dma.done.wait [#allocation10], 256  }
 0x4a2   :  { %3494 = vsyncadd [#allocation10], 4294967040 }
 0x4a3   :  { %3071 = vsyncpa [#allocation3], 1 }
 0x4a4   :  { %3072 = vsyncpa [#allocation6], 1 }
 0x4a5   :  { %3073 = vsyncpa [#allocation4], 1 }
 0x4a6   :  { %3074 = vsyncpa [#allocation10], 1 }

</bundles_post_ra>
